<compile_context>
chip_gen: v7x
topology: tpu7x:2x2x1
jax: 0.10.0
libtpu: 0.0.40
codegen_flags: <defaults>
</compile_context>

<pallas_src>
import functools
from math import floor

import jax
import jax.numpy as jnp
from jax import lax
from jax.experimental import pallas as pl
from jax.experimental.pallas import tpu as pltpu


def conv_output_shape(h_w, kernel_size=1, stride=1, pad=0, dilation=1):
    h = floor((h_w[0] + 2 * pad - dilation * (kernel_size - 1) - 1) / stride + 1)
    w = floor((h_w[1] + 2 * pad - dilation * (kernel_size - 1) - 1) / stride + 1)
    return (h, w)


# ----------------------------- fused Pallas kernel ---------------------------------

def _fused_cnn_kernel(p1_ref, w1_ref, b1_ref, w2_ref, b2_ref,
                      wd1_ref, bd1_ref, wd2_ref, bd2_ref,
                      out_ref, c1_ref, c2_ref,
                      *, n, ow1, oh2, ow2, kh2, kw2, s2):
    """Entire CNN forward on VMEM-resident operands.

    Row layouts (all 2-D, channels on lanes):
      p1_ref : (OH1*OW1*N, C0*KH1*KW1)  rows ordered (h, w, n)
      c1_ref : (OH1*OW1*N, 16)          rows ordered (h, w, n)   [scratch]
      c2_ref : (OH2*OW2*N, 32)          rows ordered (pos, n)    [scratch]
      out    : (N, output_size)
    """
    c1_ch = b1_ref.shape[1]            # 16
    c2_ch = b2_ref.shape[1]            # 32
    enc = bd1_ref.shape[1]             # encoding_size

    # ---- conv1 + relu: one big (M1, K1) x (K1, 16) matmul --------------------------
    c1_ref[...] = jnp.maximum(
        jnp.dot(p1_ref[...], w1_ref[...], preferred_element_type=jnp.float32)
        + b1_ref[...], 0.0)

    # ---- conv2 + relu: per output position, accumulate KH2*KW2 tap matmuls ---------
    # c1 rows are (h*OW1 + w)*n + batch, so every tap slice is a contiguous (N, 16) block.
    for p in range(oh2 * ow2):
        i2, j2 = p // ow2, p % ow2
        acc = jnp.zeros((n, c2_ch), jnp.float32)
        for ki in range(kh2):
            for kj in range(kw2):
                r0 = ((i2 * s2 + ki) * ow1 + (j2 * s2 + kj)) * n
                t = ki * kw2 + kj
                acc = acc + jnp.dot(c1_ref[r0:r0 + n, :],
                                    w2_ref[t * c1_ch:(t + 1) * c1_ch, :],
                                    preferred_element_type=jnp.float32)
        c2_ref[p * n:(p + 1) * n, :] = jnp.maximum(acc + b2_ref[...], 0.0)

    # ---- dense1 + relu: NCHW-flatten is folded into wd1's row permutation (done at init),
    #      so here it is just a sum of per-position (N, 32) x (32, enc) dots. -------------
    acc1 = jnp.zeros((n, enc), jnp.float32)
    for p in range(oh2 * ow2):
        acc1 = acc1 + jnp.dot(c2_ref[p * n:(p + 1) * n, :],
                              wd1_ref[p * c2_ch:(p + 1) * c2_ch, :],
                              preferred_element_type=jnp.float32)
    h1 = jnp.maximum(acc1 + bd1_ref[...], 0.0)

    # ---- dense2 --------------------------------------------------------------------
    out_ref[...] = (jnp.dot(h1, wd2_ref[...], preferred_element_type=jnp.float32)
                    + bd2_ref[...]).astype(out_ref.dtype)


# ----------------------------------- model -----------------------------------------

class CNNPallas:
    """JAX/Pallas port of the PyTorch CNN module (same math as CNN.forward)."""

    def __init__(self, input_shape, encoding_size=64, output_size=7, key=None):
        h, w, c0 = input_shape
        self.kh1, self.kw1, self.s1 = 8, 8, 4
        self.kh2, self.kw2, self.s2 = 4, 4, 2
        self.c1_ch, self.c2_ch = 16, 32
        self.oh1, self.ow1 = conv_output_shape((h, w), 8, 4)
        self.oh2, self.ow2 = conv_output_shape((self.oh1, self.ow1), 4, 2)
        self.encoding_size = encoding_size
        self.output_size = output_size
        self.final_flat = self.oh2 * self.ow2 * self.c2_ch

        if key is None:
            key = jax.random.PRNGKey(0)
        ks = jax.random.split(key, 8)
        s = 0.05
        # Canonical (PyTorch-layout) parameters — used by the pure-JAX reference.
        self.conv1_w = s * jax.random.normal(ks[0], (16, c0, 8, 8), jnp.float32)    # OIHW
        self.conv1_b = s * jax.random.normal(ks[1], (16,), jnp.float32)
        self.conv2_w = s * jax.random.normal(ks[2], (32, 16, 4, 4), jnp.float32)    # OIHW
        self.conv2_b = s * jax.random.normal(ks[3], (32,), jnp.float32)
        self.dense1_w = s * jax.random.normal(ks[4], (encoding_size, self.final_flat), jnp.float32)
        self.dense1_b = s * jax.random.normal(ks[5], (encoding_size,), jnp.float32)
        self.dense2_w = s * jax.random.normal(ks[6], (output_size, encoding_size), jnp.float32)
        self.dense2_b = s * jax.random.normal(ks[7], (output_size,), jnp.float32)

        # ---- one-time weight pre-layout into matmul-ready matrices (no .T on hot path) ----
        # conv1: patches feature order is (c, kh, kw) -> same as OIHW flatten.
        self.w1_mat = self.conv1_w.reshape(16, c0 * self.kh1 * self.kw1).T          # (K1, 16)
        self.b1_row = self.conv1_b.reshape(1, 16)
        # conv2: rows ordered (tap, c_in) so each tap's (16, 32) block is contiguous.
        self.w2_mat = jnp.transpose(self.conv2_w, (2, 3, 1, 0)).reshape(
            self.kh2 * self.kw2 * self.c1_ch, self.c2_ch)                           # (KH*KW*16, 32)
        self.b2_row = self.conv2_b.reshape(1, 32)
        # dense1: permute rows from NCHW flatten order (c, oh2, ow2) to the kernel's
        # ((oh2, ow2), c) order so torch flatten semantics are preserved exactly.
        self.wd1_mat = jnp.transpose(
            self.dense1_w.reshape(encoding_size, self.c2_ch, self.oh2, self.ow2),
            (2, 3, 1, 0)).reshape(self.final_flat, encoding_size)                   # (flat, enc)
        self.bd1_row = self.dense1_b.reshape(1, encoding_size)
        self.wd2_mat = self.dense2_w.T                                              # (enc, out)
        self.bd2_row = self.dense2_b.reshape(1, output_size)

        self._forward = jax.jit(self._forward_impl)

    def _forward_impl(self, visual_obs):
        x = visual_obs.astype(jnp.float32)                     # NHWC, no transpose
        n = x.shape[0]
        k1 = x.shape[3] * self.kh1 * self.kw1

        # Single XLA op for conv1 im2col (feature order (c, kh, kw)).
        p1 = lax.conv_general_dilated_patches(
            x, filter_shape=(self.kh1, self.kw1),
            window_strides=(self.s1, self.s1), padding="VALID",
            dimension_numbers=("NHWC", "HWIO", "NHWC"))        # (N, OH1, OW1, K1)
        # Rows ordered (h, w, n): makes every conv2 tap slice contiguous inside the kernel.
        p1 = jnp.transpose(p1, (1, 2, 0, 3)).reshape(self.oh1 * self.ow1 * n, k1)

        m1 = self.oh1 * self.ow1 * n
        m2 = self.oh2 * self.ow2 * n
        operands = (p1, self.w1_mat, self.b1_row, self.w2_mat, self.b2_row,
                    self.wd1_mat, self.bd1_row, self.wd2_mat, self.bd2_row)

        flops = 2 * (m1 * k1 * self.c1_ch
                     + m2 * (self.kh2 * self.kw2 * self.c1_ch) * self.c2_ch
                     + n * self.final_flat * self.encoding_size
                     + n * self.encoding_size * self.output_size)
        bytes_accessed = 4 * (sum(int(a.size) for a in operands) + n * self.output_size)

        kernel = functools.partial(
            _fused_cnn_kernel, n=n, ow1=self.ow1, oh2=self.oh2, ow2=self.ow2,
            kh2=self.kh2, kw2=self.kw2, s2=self.s2)

        return pl.pallas_call(
            kernel,
            out_shape=jax.ShapeDtypeStruct((n, self.output_size), jnp.float32),
            in_specs=[pl.BlockSpec(memory_space=pltpu.MemorySpace.VMEM)] * len(operands),
            out_specs=pl.BlockSpec(memory_space=pltpu.MemorySpace.VMEM),
            scratch_shapes=[
                pltpu.VMEM((m1, self.c1_ch), jnp.float32),   # conv1 activations (stay in VMEM)
                pltpu.VMEM((m2, self.c2_ch), jnp.float32),   # conv2 activations (stay in VMEM)
            ],
            cost_estimate=pl.CostEstimate(flops=flops, transcendentals=0,
                                          bytes_accessed=bytes_accessed),
        )(*operands)

    def __call__(self, visual_obs):
        # visual_obs: (N, H, W, C), like the torch module (it permutes internally).
        return self._forward(visual_obs)


# ----------------------------- pure JAX reference -----------------------------------

def _reference(model, visual_obs):
    """Mirrors the PyTorch CNN.forward exactly (NCHW path, canonical weights)."""
    x = visual_obs.astype(jnp.float32).transpose(0, 3, 1, 2)                  # NCHW
    c1 = lax.conv_general_dilated(x, model.conv1_w, (4, 4), "VALID",
                                  dimension_numbers=("NCHW", "OIHW", "NCHW"))
    c1 = jnp.maximum(c1 + model.conv1_b[None, :, None, None], 0.0)
    c2 = lax.conv_general_dilated(c1, model.conv2_w, (2, 2), "VALID",
                                  dimension_numbers=("NCHW", "OIHW", "NCHW"))
    c2 = jnp.maximum(c2 + model.conv2_b[None, :, None, None], 0.0)
    flat = c2.reshape(c2.shape[0], model.final_flat)                          # NCHW flatten order
    h1 = jnp.maximum(flat @ model.dense1_w.T + model.dense1_b, 0.0)
    return h1 @ model.dense2_w.T + model.dense2_b


# ----------------------------------- main --------------------------------------------

if __name__ == "__main__":
    key = jax.random.PRNGKey(0)
    k_in, k_par = jax.random.split(key)

    H, W, C = 32, 32, 3      # conv1 -> 7x7x16, conv2 -> 2x2x32, final_flat = 128
    N = 2
    visual_obs = jax.random.uniform(k_in, (N, H, W, C), jnp.float32)

    model = CNNPallas((H, W, C), encoding_size=64, output_size=7, key=k_par)

    out = jax.block_until_ready(model(visual_obs))
    assert out.shape == (N, 7), out.shape

    ref = jax.block_until_ready(_reference(model, visual_obs))
    max_err = float(jnp.max(jnp.abs(out - ref)))
    assert jnp.allclose(out, ref, atol=5e-4, rtol=5e-4), f"mismatch vs reference (max abs err {max_err})"

    print("KERNEL_OK")
</pallas_src>

<mosaic_0001>
module attributes {stable_mosaic.version = 11 : i64} {
  func.func @_fused_cnn_kernel(%arg0: memref<98x192xf32, #tpu.memory_space<vmem>>, %arg1: memref<192x16xf32, #tpu.memory_space<vmem>>, %arg2: memref<1x16xf32, #tpu.memory_space<vmem>>, %arg3: memref<256x32xf32, #tpu.memory_space<vmem>>, %arg4: memref<1x32xf32, #tpu.memory_space<vmem>>, %arg5: memref<128x64xf32, #tpu.memory_space<vmem>>, %arg6: memref<1x64xf32, #tpu.memory_space<vmem>>, %arg7: memref<64x7xf32, #tpu.memory_space<vmem>>, %arg8: memref<1x7xf32, #tpu.memory_space<vmem>>, %arg9: memref<2x7xf32, #tpu.memory_space<vmem>>, %arg10: memref<98x16xf32, #tpu.memory_space<vmem>>, %arg11: memref<8x32xf32, #tpu.memory_space<vmem>>) attributes {dimension_semantics = [], scalar_prefetch = 0 : i64, scratch_operands = 2 : i64, tpu.core_type = #tpu.core_type<tc>} {
    %c0 = arith.constant 0 : index
    %c0_0 = arith.constant 0 : index
    %0 = vector.load %arg0[%c0, %c0_0] : memref<98x192xf32, #tpu.memory_space<vmem>>, vector<98x192xf32>
    %c0_1 = arith.constant 0 : index
    %c0_2 = arith.constant 0 : index
    %1 = vector.load %arg1[%c0_1, %c0_2] : memref<192x16xf32, #tpu.memory_space<vmem>>, vector<192x16xf32>
    %cst = arith.constant dense<0.000000e+00> : vector<98x16xf32>
    %2 = tpu.matmul %0, %1, %cst {dimension_numbers = #tpu.dot_dimension_numbers<[1], [0], [0], [1], [0, 0, 1, 1], [], []>} : vector<98x192xf32>, vector<192x16xf32>, vector<98x16xf32> -> vector<98x16xf32>
    %c0_3 = arith.constant 0 : index
    %c0_4 = arith.constant 0 : index
    %3 = vector.load %arg2[%c0_3, %c0_4] : memref<1x16xf32, #tpu.memory_space<vmem>>, vector<1x16xf32>
    %4 = vector.broadcast %3 : vector<1x16xf32> to vector<98x16xf32>
    %5 = arith.addf %2, %4 : vector<98x16xf32>
    %cst_5 = arith.constant 0.000000e+00 : f32
    %6 = vector.broadcast %cst_5 : f32 to vector<98x16xf32>
    %7 = arith.maximumf %5, %6 : vector<98x16xf32>
    %c0_6 = arith.constant 0 : index
    %c0_7 = arith.constant 0 : index
    %8 = vector.load %arg10[%c0_6, %c0_7] : memref<98x16xf32, #tpu.memory_space<vmem>>, vector<98x16xf32>
    tpu.vector_store %arg10[%c0_6, %c0_7], %7 {strides = array<i32>} : memref<98x16xf32, #tpu.memory_space<vmem>>, vector<98x16xf32>,
    %cst_8 = arith.constant 0.000000e+00 : f32
    %9 = vector.broadcast %cst_8 : f32 to vector<2x32xf32>
    %c0_9 = arith.constant 0 : index
    %c0_10 = arith.constant 0 : index
    %10 = vector.load %arg10[%c0_9, %c0_10] : memref<98x16xf32, #tpu.memory_space<vmem>>, vector<2x16xf32>
    %c0_11 = arith.constant 0 : index
    %c0_12 = arith.constant 0 : index
    %11 = vector.load %arg3[%c0_11, %c0_12] : memref<256x32xf32, #tpu.memory_space<vmem>>, vector<16x32xf32>
    %cst_13 = arith.constant dense<0.000000e+00> : vector<2x32xf32>
    %12 = tpu.matmul %10, %11, %cst_13 {dimension_numbers = #tpu.dot_dimension_numbers<[1], [0], [0], [1], [0, 0, 1, 1], [], []>} : vector<2x16xf32>, vector<16x32xf32>, vector<2x32xf32> -> vector<2x32xf32>
    %13 = arith.addf %9, %12 : vector<2x32xf32>
    %c2 = arith.constant 2 : index
    %c0_14 = arith.constant 0 : index
    %14 = vector.load %arg10[%c2, %c0_14] : memref<98x16xf32, #tpu.memory_space<vmem>>, vector<2x16xf32>
    %c16 = arith.constant 16 : index
    %c0_15 = arith.constant 0 : index
    %15 = vector.load %arg3[%c16, %c0_15] : memref<256x32xf32, #tpu.memory_space<vmem>>, vector<16x32xf32>
    %cst_16 = arith.constant dense<0.000000e+00> : vector<2x32xf32>
    %16 = tpu.matmul %14, %15, %cst_16 {dimension_numbers = #tpu.dot_dimension_numbers<[1], [0], [0], [1], [0, 0, 1, 1], [], []>} : vector<2x16xf32>, vector<16x32xf32>, vector<2x32xf32> -> vector<2x32xf32>
    %17 = arith.addf %13, %16 : vector<2x32xf32>
    %c4 = arith.constant 4 : index
    %c0_17 = arith.constant 0 : index
    %18 = vector.load %arg10[%c4, %c0_17] : memref<98x16xf32, #tpu.memory_space<vmem>>, vector<2x16xf32>
    %c32 = arith.constant 32 : index
    %c0_18 = arith.constant 0 : index
    %19 = vector.load %arg3[%c32, %c0_18] : memref<256x32xf32, #tpu.memory_space<vmem>>, vector<16x32xf32>
    %cst_19 = arith.constant dense<0.000000e+00> : vector<2x32xf32>
    %20 = tpu.matmul %18, %19, %cst_19 {dimension_numbers = #tpu.dot_dimension_numbers<[1], [0], [0], [1], [0, 0, 1, 1], [], []>} : vector<2x16xf32>, vector<16x32xf32>, vector<2x32xf32> -> vector<2x32xf32>
    %21 = arith.addf %17, %20 : vector<2x32xf32>
    %c6 = arith.constant 6 : index
    %c0_20 = arith.constant 0 : index
    %22 = vector.load %arg10[%c6, %c0_20] : memref<98x16xf32, #tpu.memory_space<vmem>>, vector<2x16xf32>
    %c48 = arith.constant 48 : index
    %c0_21 = arith.constant 0 : index
    %23 = vector.load %arg3[%c48, %c0_21] : memref<256x32xf32, #tpu.memory_space<vmem>>, vector<16x32xf32>
    %cst_22 = arith.constant dense<0.000000e+00> : vector<2x32xf32>
    %24 = tpu.matmul %22, %23, %cst_22 {dimension_numbers = #tpu.dot_dimension_numbers<[1], [0], [0], [1], [0, 0, 1, 1], [], []>} : vector<2x16xf32>, vector<16x32xf32>, vector<2x32xf32> -> vector<2x32xf32>
    %25 = arith.addf %21, %24 : vector<2x32xf32>
    %c14 = arith.constant 14 : index
    %c0_23 = arith.constant 0 : index
    %26 = vector.load %arg10[%c14, %c0_23] : memref<98x16xf32, #tpu.memory_space<vmem>>, vector<2x16xf32>
    %c64 = arith.constant 64 : index
    %c0_24 = arith.constant 0 : index
    %27 = vector.load %arg3[%c64, %c0_24] : memref<256x32xf32, #tpu.memory_space<vmem>>, vector<16x32xf32>
    %cst_25 = arith.constant dense<0.000000e+00> : vector<2x32xf32>
    %28 = tpu.matmul %26, %27, %cst_25 {dimension_numbers = #tpu.dot_dimension_numbers<[1], [0], [0], [1], [0, 0, 1, 1], [], []>} : vector<2x16xf32>, vector<16x32xf32>, vector<2x32xf32> -> vector<2x32xf32>
    %29 = arith.addf %25, %28 : vector<2x32xf32>
    %c16_26 = arith.constant 16 : index
    %c0_27 = arith.constant 0 : index
    %30 = vector.load %arg10[%c16_26, %c0_27] : memref<98x16xf32, #tpu.memory_space<vmem>>, vector<2x16xf32>
    %c80 = arith.constant 80 : index
    %c0_28 = arith.constant 0 : index
    %31 = vector.load %arg3[%c80, %c0_28] : memref<256x32xf32, #tpu.memory_space<vmem>>, vector<16x32xf32>
    %cst_29 = arith.constant dense<0.000000e+00> : vector<2x32xf32>
    %32 = tpu.matmul %30, %31, %cst_29 {dimension_numbers = #tpu.dot_dimension_numbers<[1], [0], [0], [1], [0, 0, 1, 1], [], []>} : vector<2x16xf32>, vector<16x32xf32>, vector<2x32xf32> -> vector<2x32xf32>
    %33 = arith.addf %29, %32 : vector<2x32xf32>
    %c18 = arith.constant 18 : index
    %c0_30 = arith.constant 0 : index
    %34 = vector.load %arg10[%c18, %c0_30] : memref<98x16xf32, #tpu.memory_space<vmem>>, vector<2x16xf32>
    %c96 = arith.constant 96 : index
    %c0_31 = arith.constant 0 : index
    %35 = vector.load %arg3[%c96, %c0_31] : memref<256x32xf32, #tpu.memory_space<vmem>>, vector<16x32xf32>
    %cst_32 = arith.constant dense<0.000000e+00> : vector<2x32xf32>
    %36 = tpu.matmul %34, %35, %cst_32 {dimension_numbers = #tpu.dot_dimension_numbers<[1], [0], [0], [1], [0, 0, 1, 1], [], []>} : vector<2x16xf32>, vector<16x32xf32>, vector<2x32xf32> -> vector<2x32xf32>
    %37 = arith.addf %33, %36 : vector<2x32xf32>
    %c20 = arith.constant 20 : index
    %c0_33 = arith.constant 0 : index
    %38 = vector.load %arg10[%c20, %c0_33] : memref<98x16xf32, #tpu.memory_space<vmem>>, vector<2x16xf32>
    %c112 = arith.constant 112 : index
    %c0_34 = arith.constant 0 : index
    %39 = vector.load %arg3[%c112, %c0_34] : memref<256x32xf32, #tpu.memory_space<vmem>>, vector<16x32xf32>
    %cst_35 = arith.constant dense<0.000000e+00> : vector<2x32xf32>
    %40 = tpu.matmul %38, %39, %cst_35 {dimension_numbers = #tpu.dot_dimension_numbers<[1], [0], [0], [1], [0, 0, 1, 1], [], []>} : vector<2x16xf32>, vector<16x32xf32>, vector<2x32xf32> -> vector<2x32xf32>
    %41 = arith.addf %37, %40 : vector<2x32xf32>
    %c28 = arith.constant 28 : index
    %c0_36 = arith.constant 0 : index
    %42 = vector.load %arg10[%c28, %c0_36] : memref<98x16xf32, #tpu.memory_space<vmem>>, vector<2x16xf32>
    %c128 = arith.constant 128 : index
    %c0_37 = arith.constant 0 : index
    %43 = vector.load %arg3[%c128, %c0_37] : memref<256x32xf32, #tpu.memory_space<vmem>>, vector<16x32xf32>
    %cst_38 = arith.constant dense<0.000000e+00> : vector<2x32xf32>
    %44 = tpu.matmul %42, %43, %cst_38 {dimension_numbers = #tpu.dot_dimension_numbers<[1], [0], [0], [1], [0, 0, 1, 1], [], []>} : vector<2x16xf32>, vector<16x32xf32>, vector<2x32xf32> -> vector<2x32xf32>
    %45 = arith.addf %41, %44 : vector<2x32xf32>
    %c30 = arith.constant 30 : index
    %c0_39 = arith.constant 0 : index
    %46 = vector.load %arg10[%c30, %c0_39] : memref<98x16xf32, #tpu.memory_space<vmem>>, vector<2x16xf32>
    %c144 = arith.constant 144 : index
    %c0_40 = arith.constant 0 : index
    %47 = vector.load %arg3[%c144, %c0_40] : memref<256x32xf32, #tpu.memory_space<vmem>>, vector<16x32xf32>
    %cst_41 = arith.constant dense<0.000000e+00> : vector<2x32xf32>
    %48 = tpu.matmul %46, %47, %cst_41 {dimension_numbers = #tpu.dot_dimension_numbers<[1], [0], [0], [1], [0, 0, 1, 1], [], []>} : vector<2x16xf32>, vector<16x32xf32>, vector<2x32xf32> -> vector<2x32xf32>
    %49 = arith.addf %45, %48 : vector<2x32xf32>
    %c32_42 = arith.constant 32 : index
    %c0_43 = arith.constant 0 : index
    %50 = vector.load %arg10[%c32_42, %c0_43] : memref<98x16xf32, #tpu.memory_space<vmem>>, vector<2x16xf32>
    %c160 = arith.constant 160 : index
    %c0_44 = arith.constant 0 : index
    %51 = vector.load %arg3[%c160, %c0_44] : memref<256x32xf32, #tpu.memory_space<vmem>>, vector<16x32xf32>
    %cst_45 = arith.constant dense<0.000000e+00> : vector<2x32xf32>
    %52 = tpu.matmul %50, %51, %cst_45 {dimension_numbers = #tpu.dot_dimension_numbers<[1], [0], [0], [1], [0, 0, 1, 1], [], []>} : vector<2x16xf32>, vector<16x32xf32>, vector<2x32xf32> -> vector<2x32xf32>
    %53 = arith.addf %49, %52 : vector<2x32xf32>
    %c34 = arith.constant 34 : index
    %c0_46 = arith.constant 0 : index
    %54 = vector.load %arg10[%c34, %c0_46] : memref<98x16xf32, #tpu.memory_space<vmem>>, vector<2x16xf32>
    %c176 = arith.constant 176 : index
    %c0_47 = arith.constant 0 : index
    %55 = vector.load %arg3[%c176, %c0_47] : memref<256x32xf32, #tpu.memory_space<vmem>>, vector<16x32xf32>
    %cst_48 = arith.constant dense<0.000000e+00> : vector<2x32xf32>
    %56 = tpu.matmul %54, %55, %cst_48 {dimension_numbers = #tpu.dot_dimension_numbers<[1], [0], [0], [1], [0, 0, 1, 1], [], []>} : vector<2x16xf32>, vector<16x32xf32>, vector<2x32xf32> -> vector<2x32xf32>
    %57 = arith.addf %53, %56 : vector<2x32xf32>
    %c42 = arith.constant 42 : index
    %c0_49 = arith.constant 0 : index
    %58 = vector.load %arg10[%c42, %c0_49] : memref<98x16xf32, #tpu.memory_space<vmem>>, vector<2x16xf32>
    %c192 = arith.constant 192 : index
    %c0_50 = arith.constant 0 : index
    %59 = vector.load %arg3[%c192, %c0_50] : memref<256x32xf32, #tpu.memory_space<vmem>>, vector<16x32xf32>
    %cst_51 = arith.constant dense<0.000000e+00> : vector<2x32xf32>
    %60 = tpu.matmul %58, %59, %cst_51 {dimension_numbers = #tpu.dot_dimension_numbers<[1], [0], [0], [1], [0, 0, 1, 1], [], []>} : vector<2x16xf32>, vector<16x32xf32>, vector<2x32xf32> -> vector<2x32xf32>
    %61 = arith.addf %57, %60 : vector<2x32xf32>
    %c44 = arith.constant 44 : index
    %c0_52 = arith.constant 0 : index
    %62 = vector.load %arg10[%c44, %c0_52] : memref<98x16xf32, #tpu.memory_space<vmem>>, vector<2x16xf32>
    %c208 = arith.constant 208 : index
    %c0_53 = arith.constant 0 : index
    %63 = vector.load %arg3[%c208, %c0_53] : memref<256x32xf32, #tpu.memory_space<vmem>>, vector<16x32xf32>
    %cst_54 = arith.constant dense<0.000000e+00> : vector<2x32xf32>
    %64 = tpu.matmul %62, %63, %cst_54 {dimension_numbers = #tpu.dot_dimension_numbers<[1], [0], [0], [1], [0, 0, 1, 1], [], []>} : vector<2x16xf32>, vector<16x32xf32>, vector<2x32xf32> -> vector<2x32xf32>
    %65 = arith.addf %61, %64 : vector<2x32xf32>
    %c46 = arith.constant 46 : index
    %c0_55 = arith.constant 0 : index
    %66 = vector.load %arg10[%c46, %c0_55] : memref<98x16xf32, #tpu.memory_space<vmem>>, vector<2x16xf32>
    %c224 = arith.constant 224 : index
    %c0_56 = arith.constant 0 : index
    %67 = vector.load %arg3[%c224, %c0_56] : memref<256x32xf32, #tpu.memory_space<vmem>>, vector<16x32xf32>
    %cst_57 = arith.constant dense<0.000000e+00> : vector<2x32xf32>
    %68 = tpu.matmul %66, %67, %cst_57 {dimension_numbers = #tpu.dot_dimension_numbers<[1], [0], [0], [1], [0, 0, 1, 1], [], []>} : vector<2x16xf32>, vector<16x32xf32>, vector<2x32xf32> -> vector<2x32xf32>
    %69 = arith.addf %65, %68 : vector<2x32xf32>
    %c48_58 = arith.constant 48 : index
    %c0_59 = arith.constant 0 : index
    %70 = vector.load %arg10[%c48_58, %c0_59] : memref<98x16xf32, #tpu.memory_space<vmem>>, vector<2x16xf32>
    %c240 = arith.constant 240 : index
    %c0_60 = arith.constant 0 : index
    %71 = vector.load %arg3[%c240, %c0_60] : memref<256x32xf32, #tpu.memory_space<vmem>>, vector<16x32xf32>
    %cst_61 = arith.constant dense<0.000000e+00> : vector<2x32xf32>
    %72 = tpu.matmul %70, %71, %cst_61 {dimension_numbers = #tpu.dot_dimension_numbers<[1], [0], [0], [1], [0, 0, 1, 1], [], []>} : vector<2x16xf32>, vector<16x32xf32>, vector<2x32xf32> -> vector<2x32xf32>
    %73 = arith.addf %69, %72 : vector<2x32xf32>
    %c0_62 = arith.constant 0 : index
    %c0_63 = arith.constant 0 : index
    %74 = vector.load %arg4[%c0_62, %c0_63] : memref<1x32xf32, #tpu.memory_space<vmem>>, vector<1x32xf32>
    %75 = vector.broadcast %74 : vector<1x32xf32> to vector<2x32xf32>
    %76 = arith.addf %73, %75 : vector<2x32xf32>
    %cst_64 = arith.constant 0.000000e+00 : f32
    %77 = vector.broadcast %cst_64 : f32 to vector<2x32xf32>
    %78 = arith.maximumf %76, %77 : vector<2x32xf32>
    %c0_65 = arith.constant 0 : index
    %c0_66 = arith.constant 0 : index
    %79 = vector.load %arg11[%c0_65, %c0_66] : memref<8x32xf32, #tpu.memory_space<vmem>>, vector<2x32xf32>
    tpu.vector_store %arg11[%c0_65, %c0_66], %78 {strides = array<i32>} : memref<8x32xf32, #tpu.memory_space<vmem>>, vector<2x32xf32>,
    %cst_67 = arith.constant 0.000000e+00 : f32
    %80 = vector.broadcast %cst_67 : f32 to vector<2x32xf32>
    %c4_68 = arith.constant 4 : index
    %c0_69 = arith.constant 0 : index
    %81 = vector.load %arg10[%c4_68, %c0_69] : memref<98x16xf32, #tpu.memory_space<vmem>>, vector<2x16xf32>
    %c0_70 = arith.constant 0 : index
    %c0_71 = arith.constant 0 : index
    %82 = vector.load %arg3[%c0_70, %c0_71] : memref<256x32xf32, #tpu.memory_space<vmem>>, vector<16x32xf32>
    %cst_72 = arith.constant dense<0.000000e+00> : vector<2x32xf32>
    %83 = tpu.matmul %81, %82, %cst_72 {dimension_numbers = #tpu.dot_dimension_numbers<[1], [0], [0], [1], [0, 0, 1, 1], [], []>} : vector<2x16xf32>, vector<16x32xf32>, vector<2x32xf32> -> vector<2x32xf32>
    %84 = arith.addf %80, %83 : vector<2x32xf32>
    %c6_73 = arith.constant 6 : index
    %c0_74 = arith.constant 0 : index
    %85 = vector.load %arg10[%c6_73, %c0_74] : memref<98x16xf32, #tpu.memory_space<vmem>>, vector<2x16xf32>
    %c16_75 = arith.constant 16 : index
    %c0_76 = arith.constant 0 : index
    %86 = vector.load %arg3[%c16_75, %c0_76] : memref<256x32xf32, #tpu.memory_space<vmem>>, vector<16x32xf32>
    %cst_77 = arith.constant dense<0.000000e+00> : vector<2x32xf32>
    %87 = tpu.matmul %85, %86, %cst_77 {dimension_numbers = #tpu.dot_dimension_numbers<[1], [0], [0], [1], [0, 0, 1, 1], [], []>} : vector<2x16xf32>, vector<16x32xf32>, vector<2x32xf32> -> vector<2x32xf32>
    %88 = arith.addf %84, %87 : vector<2x32xf32>
    %c8 = arith.constant 8 : index
    %c0_78 = arith.constant 0 : index
    %89 = vector.load %arg10[%c8, %c0_78] : memref<98x16xf32, #tpu.memory_space<vmem>>, vector<2x16xf32>
    %c32_79 = arith.constant 32 : index
    %c0_80 = arith.constant 0 : index
    %90 = vector.load %arg3[%c32_79, %c0_80] : memref<256x32xf32, #tpu.memory_space<vmem>>, vector<16x32xf32>
    %cst_81 = arith.constant dense<0.000000e+00> : vector<2x32xf32>
    %91 = tpu.matmul %89, %90, %cst_81 {dimension_numbers = #tpu.dot_dimension_numbers<[1], [0], [0], [1], [0, 0, 1, 1], [], []>} : vector<2x16xf32>, vector<16x32xf32>, vector<2x32xf32> -> vector<2x32xf32>
    %92 = arith.addf %88, %91 : vector<2x32xf32>
    %c10 = arith.constant 10 : index
    %c0_82 = arith.constant 0 : index
    %93 = vector.load %arg10[%c10, %c0_82] : memref<98x16xf32, #tpu.memory_space<vmem>>, vector<2x16xf32>
    %c48_83 = arith.constant 48 : index
    %c0_84 = arith.constant 0 : index
    %94 = vector.load %arg3[%c48_83, %c0_84] : memref<256x32xf32, #tpu.memory_space<vmem>>, vector<16x32xf32>
    %cst_85 = arith.constant dense<0.000000e+00> : vector<2x32xf32>
    %95 = tpu.matmul %93, %94, %cst_85 {dimension_numbers = #tpu.dot_dimension_numbers<[1], [0], [0], [1], [0, 0, 1, 1], [], []>} : vector<2x16xf32>, vector<16x32xf32>, vector<2x32xf32> -> vector<2x32xf32>
    %96 = arith.addf %92, %95 : vector<2x32xf32>
    %c18_86 = arith.constant 18 : index
    %c0_87 = arith.constant 0 : index
    %97 = vector.load %arg10[%c18_86, %c0_87] : memref<98x16xf32, #tpu.memory_space<vmem>>, vector<2x16xf32>
    %c64_88 = arith.constant 64 : index
    %c0_89 = arith.constant 0 : index
    %98 = vector.load %arg3[%c64_88, %c0_89] : memref<256x32xf32, #tpu.memory_space<vmem>>, vector<16x32xf32>
    %cst_90 = arith.constant dense<0.000000e+00> : vector<2x32xf32>
    %99 = tpu.matmul %97, %98, %cst_90 {dimension_numbers = #tpu.dot_dimension_numbers<[1], [0], [0], [1], [0, 0, 1, 1], [], []>} : vector<2x16xf32>, vector<16x32xf32>, vector<2x32xf32> -> vector<2x32xf32>
    %100 = arith.addf %96, %99 : vector<2x32xf32>
    %c20_91 = arith.constant 20 : index
    %c0_92 = arith.constant 0 : index
    %101 = vector.load %arg10[%c20_91, %c0_92] : memref<98x16xf32, #tpu.memory_space<vmem>>, vector<2x16xf32>
    %c80_93 = arith.constant 80 : index
    %c0_94 = arith.constant 0 : index
    %102 = vector.load %arg3[%c80_93, %c0_94] : memref<256x32xf32, #tpu.memory_space<vmem>>, vector<16x32xf32>
    %cst_95 = arith.constant dense<0.000000e+00> : vector<2x32xf32>
    %103 = tpu.matmul %101, %102, %cst_95 {dimension_numbers = #tpu.dot_dimension_numbers<[1], [0], [0], [1], [0, 0, 1, 1], [], []>} : vector<2x16xf32>, vector<16x32xf32>, vector<2x32xf32> -> vector<2x32xf32>
    %104 = arith.addf %100, %103 : vector<2x32xf32>
    %c22 = arith.constant 22 : index
    %c0_96 = arith.constant 0 : index
    %105 = vector.load %arg10[%c22, %c0_96] : memref<98x16xf32, #tpu.memory_space<vmem>>, vector<2x16xf32>
    %c96_97 = arith.constant 96 : index
    %c0_98 = arith.constant 0 : index
    %106 = vector.load %arg3[%c96_97, %c0_98] : memref<256x32xf32, #tpu.memory_space<vmem>>, vector<16x32xf32>
    %cst_99 = arith.constant dense<0.000000e+00> : vector<2x32xf32>
    %107 = tpu.matmul %105, %106, %cst_99 {dimension_numbers = #tpu.dot_dimension_numbers<[1], [0], [0], [1], [0, 0, 1, 1], [], []>} : vector<2x16xf32>, vector<16x32xf32>, vector<2x32xf32> -> vector<2x32xf32>
    %108 = arith.addf %104, %107 : vector<2x32xf32>
    %c24 = arith.constant 24 : index
    %c0_100 = arith.constant 0 : index
    %109 = vector.load %arg10[%c24, %c0_100] : memref<98x16xf32, #tpu.memory_space<vmem>>, vector<2x16xf32>
    %c112_101 = arith.constant 112 : index
    %c0_102 = arith.constant 0 : index
    %110 = vector.load %arg3[%c112_101, %c0_102] : memref<256x32xf32, #tpu.memory_space<vmem>>, vector<16x32xf32>
    %cst_103 = arith.constant dense<0.000000e+00> : vector<2x32xf32>
    %111 = tpu.matmul %109, %110, %cst_103 {dimension_numbers = #tpu.dot_dimension_numbers<[1], [0], [0], [1], [0, 0, 1, 1], [], []>} : vector<2x16xf32>, vector<16x32xf32>, vector<2x32xf32> -> vector<2x32xf32>
    %112 = arith.addf %108, %111 : vector<2x32xf32>
    %c32_104 = arith.constant 32 : index
    %c0_105 = arith.constant 0 : index
    %113 = vector.load %arg10[%c32_104, %c0_105] : memref<98x16xf32, #tpu.memory_space<vmem>>, vector<2x16xf32>
    %c128_106 = arith.constant 128 : index
    %c0_107 = arith.constant 0 : index
    %114 = vector.load %arg3[%c128_106, %c0_107] : memref<256x32xf32, #tpu.memory_space<vmem>>, vector<16x32xf32>
    %cst_108 = arith.constant dense<0.000000e+00> : vector<2x32xf32>
    %115 = tpu.matmul %113, %114, %cst_108 {dimension_numbers = #tpu.dot_dimension_numbers<[1], [0], [0], [1], [0, 0, 1, 1], [], []>} : vector<2x16xf32>, vector<16x32xf32>, vector<2x32xf32> -> vector<2x32xf32>
    %116 = arith.addf %112, %115 : vector<2x32xf32>
    %c34_109 = arith.constant 34 : index
    %c0_110 = arith.constant 0 : index
    %117 = vector.load %arg10[%c34_109, %c0_110] : memref<98x16xf32, #tpu.memory_space<vmem>>, vector<2x16xf32>
    %c144_111 = arith.constant 144 : index
    %c0_112 = arith.constant 0 : index
    %118 = vector.load %arg3[%c144_111, %c0_112] : memref<256x32xf32, #tpu.memory_space<vmem>>, vector<16x32xf32>
    %cst_113 = arith.constant dense<0.000000e+00> : vector<2x32xf32>
    %119 = tpu.matmul %117, %118, %cst_113 {dimension_numbers = #tpu.dot_dimension_numbers<[1], [0], [0], [1], [0, 0, 1, 1], [], []>} : vector<2x16xf32>, vector<16x32xf32>, vector<2x32xf32> -> vector<2x32xf32>
    %120 = arith.addf %116, %119 : vector<2x32xf32>
    %c36 = arith.constant 36 : index
    %c0_114 = arith.constant 0 : index
    %121 = vector.load %arg10[%c36, %c0_114] : memref<98x16xf32, #tpu.memory_space<vmem>>, vector<2x16xf32>
    %c160_115 = arith.constant 160 : index
    %c0_116 = arith.constant 0 : index
    %122 = vector.load %arg3[%c160_115, %c0_116] : memref<256x32xf32, #tpu.memory_space<vmem>>, vector<16x32xf32>
    %cst_117 = arith.constant dense<0.000000e+00> : vector<2x32xf32>
    %123 = tpu.matmul %121, %122, %cst_117 {dimension_numbers = #tpu.dot_dimension_numbers<[1], [0], [0], [1], [0, 0, 1, 1], [], []>} : vector<2x16xf32>, vector<16x32xf32>, vector<2x32xf32> -> vector<2x32xf32>
    %124 = arith.addf %120, %123 : vector<2x32xf32>
    %c38 = arith.constant 38 : index
    %c0_118 = arith.constant 0 : index
    %125 = vector.load %arg10[%c38, %c0_118] : memref<98x16xf32, #tpu.memory_space<vmem>>, vector<2x16xf32>
    %c176_119 = arith.constant 176 : index
    %c0_120 = arith.constant 0 : index
    %126 = vector.load %arg3[%c176_119, %c0_120] : memref<256x32xf32, #tpu.memory_space<vmem>>, vector<16x32xf32>
    %cst_121 = arith.constant dense<0.000000e+00> : vector<2x32xf32>
    %127 = tpu.matmul %125, %126, %cst_121 {dimension_numbers = #tpu.dot_dimension_numbers<[1], [0], [0], [1], [0, 0, 1, 1], [], []>} : vector<2x16xf32>, vector<16x32xf32>, vector<2x32xf32> -> vector<2x32xf32>
    %128 = arith.addf %124, %127 : vector<2x32xf32>
    %c46_122 = arith.constant 46 : index
    %c0_123 = arith.constant 0 : index
    %129 = vector.load %arg10[%c46_122, %c0_123] : memref<98x16xf32, #tpu.memory_space<vmem>>, vector<2x16xf32>
    %c192_124 = arith.constant 192 : index
    %c0_125 = arith.constant 0 : index
    %130 = vector.load %arg3[%c192_124, %c0_125] : memref<256x32xf32, #tpu.memory_space<vmem>>, vector<16x32xf32>
    %cst_126 = arith.constant dense<0.000000e+00> : vector<2x32xf32>
    %131 = tpu.matmul %129, %130, %cst_126 {dimension_numbers = #tpu.dot_dimension_numbers<[1], [0], [0], [1], [0, 0, 1, 1], [], []>} : vector<2x16xf32>, vector<16x32xf32>, vector<2x32xf32> -> vector<2x32xf32>
    %132 = arith.addf %128, %131 : vector<2x32xf32>
    %c48_127 = arith.constant 48 : index
    %c0_128 = arith.constant 0 : index
    %133 = vector.load %arg10[%c48_127, %c0_128] : memref<98x16xf32, #tpu.memory_space<vmem>>, vector<2x16xf32>
    %c208_129 = arith.constant 208 : index
    %c0_130 = arith.constant 0 : index
    %134 = vector.load %arg3[%c208_129, %c0_130] : memref<256x32xf32, #tpu.memory_space<vmem>>, vector<16x32xf32>
    %cst_131 = arith.constant dense<0.000000e+00> : vector<2x32xf32>
    %135 = tpu.matmul %133, %134, %cst_131 {dimension_numbers = #tpu.dot_dimension_numbers<[1], [0], [0], [1], [0, 0, 1, 1], [], []>} : vector<2x16xf32>, vector<16x32xf32>, vector<2x32xf32> -> vector<2x32xf32>
    %136 = arith.addf %132, %135 : vector<2x32xf32>
    %c50 = arith.constant 50 : index
    %c0_132 = arith.constant 0 : index
    %137 = vector.load %arg10[%c50, %c0_132] : memref<98x16xf32, #tpu.memory_space<vmem>>, vector<2x16xf32>
    %c224_133 = arith.constant 224 : index
    %c0_134 = arith.constant 0 : index
    %138 = vector.load %arg3[%c224_133, %c0_134] : memref<256x32xf32, #tpu.memory_space<vmem>>, vector<16x32xf32>
    %cst_135 = arith.constant dense<0.000000e+00> : vector<2x32xf32>
    %139 = tpu.matmul %137, %138, %cst_135 {dimension_numbers = #tpu.dot_dimension_numbers<[1], [0], [0], [1], [0, 0, 1, 1], [], []>} : vector<2x16xf32>, vector<16x32xf32>, vector<2x32xf32> -> vector<2x32xf32>
    %140 = arith.addf %136, %139 : vector<2x32xf32>
    %c52 = arith.constant 52 : index
    %c0_136 = arith.constant 0 : index
    %141 = vector.load %arg10[%c52, %c0_136] : memref<98x16xf32, #tpu.memory_space<vmem>>, vector<2x16xf32>
    %c240_137 = arith.constant 240 : index
    %c0_138 = arith.constant 0 : index
    %142 = vector.load %arg3[%c240_137, %c0_138] : memref<256x32xf32, #tpu.memory_space<vmem>>, vector<16x32xf32>
    %cst_139 = arith.constant dense<0.000000e+00> : vector<2x32xf32>
    %143 = tpu.matmul %141, %142, %cst_139 {dimension_numbers = #tpu.dot_dimension_numbers<[1], [0], [0], [1], [0, 0, 1, 1], [], []>} : vector<2x16xf32>, vector<16x32xf32>, vector<2x32xf32> -> vector<2x32xf32>
    %144 = arith.addf %140, %143 : vector<2x32xf32>
    %c0_140 = arith.constant 0 : index
    %c0_141 = arith.constant 0 : index
    %145 = vector.load %arg4[%c0_140, %c0_141] : memref<1x32xf32, #tpu.memory_space<vmem>>, vector<1x32xf32>
    %146 = vector.broadcast %145 : vector<1x32xf32> to vector<2x32xf32>
    %147 = arith.addf %144, %146 : vector<2x32xf32>
    %cst_142 = arith.constant 0.000000e+00 : f32
    %148 = vector.broadcast %cst_142 : f32 to vector<2x32xf32>
    %149 = arith.maximumf %147, %148 : vector<2x32xf32>
    %c2_143 = arith.constant 2 : index
    %c0_144 = arith.constant 0 : index
    %150 = vector.load %arg11[%c2_143, %c0_144] : memref<8x32xf32, #tpu.memory_space<vmem>>, vector<2x32xf32>
    tpu.vector_store %arg11[%c2_143, %c0_144], %149 {strides = array<i32>} : memref<8x32xf32, #tpu.memory_space<vmem>>, vector<2x32xf32>,
    %cst_145 = arith.constant 0.000000e+00 : f32
    %151 = vector.broadcast %cst_145 : f32 to vector<2x32xf32>
    %c28_146 = arith.constant 28 : index
    %c0_147 = arith.constant 0 : index
    %152 = vector.load %arg10[%c28_146, %c0_147] : memref<98x16xf32, #tpu.memory_space<vmem>>, vector<2x16xf32>
    %c0_148 = arith.constant 0 : index
    %c0_149 = arith.constant 0 : index
    %153 = vector.load %arg3[%c0_148, %c0_149] : memref<256x32xf32, #tpu.memory_space<vmem>>, vector<16x32xf32>
    %cst_150 = arith.constant dense<0.000000e+00> : vector<2x32xf32>
    %154 = tpu.matmul %152, %153, %cst_150 {dimension_numbers = #tpu.dot_dimension_numbers<[1], [0], [0], [1], [0, 0, 1, 1], [], []>} : vector<2x16xf32>, vector<16x32xf32>, vector<2x32xf32> -> vector<2x32xf32>
    %155 = arith.addf %151, %154 : vector<2x32xf32>
    %c30_151 = arith.constant 30 : index
    %c0_152 = arith.constant 0 : index
    %156 = vector.load %arg10[%c30_151, %c0_152] : memref<98x16xf32, #tpu.memory_space<vmem>>, vector<2x16xf32>
    %c16_153 = arith.constant 16 : index
    %c0_154 = arith.constant 0 : index
    %157 = vector.load %arg3[%c16_153, %c0_154] : memref<256x32xf32, #tpu.memory_space<vmem>>, vector<16x32xf32>
    %cst_155 = arith.constant dense<0.000000e+00> : vector<2x32xf32>
    %158 = tpu.matmul %156, %157, %cst_155 {dimension_numbers = #tpu.dot_dimension_numbers<[1], [0], [0], [1], [0, 0, 1, 1], [], []>} : vector<2x16xf32>, vector<16x32xf32>, vector<2x32xf32> -> vector<2x32xf32>
    %159 = arith.addf %155, %158 : vector<2x32xf32>
    %c32_156 = arith.constant 32 : index
    %c0_157 = arith.constant 0 : index
    %160 = vector.load %arg10[%c32_156, %c0_157] : memref<98x16xf32, #tpu.memory_space<vmem>>, vector<2x16xf32>
    %c32_158 = arith.constant 32 : index
    %c0_159 = arith.constant 0 : index
    %161 = vector.load %arg3[%c32_158, %c0_159] : memref<256x32xf32, #tpu.memory_space<vmem>>, vector<16x32xf32>
    %cst_160 = arith.constant dense<0.000000e+00> : vector<2x32xf32>
    %162 = tpu.matmul %160, %161, %cst_160 {dimension_numbers = #tpu.dot_dimension_numbers<[1], [0], [0], [1], [0, 0, 1, 1], [], []>} : vector<2x16xf32>, vector<16x32xf32>, vector<2x32xf32> -> vector<2x32xf32>
    %163 = arith.addf %159, %162 : vector<2x32xf32>
    %c34_161 = arith.constant 34 : index
    %c0_162 = arith.constant 0 : index
    %164 = vector.load %arg10[%c34_161, %c0_162] : memref<98x16xf32, #tpu.memory_space<vmem>>, vector<2x16xf32>
    %c48_163 = arith.constant 48 : index
    %c0_164 = arith.constant 0 : index
    %165 = vector.load %arg3[%c48_163, %c0_164] : memref<256x32xf32, #tpu.memory_space<vmem>>, vector<16x32xf32>
    %cst_165 = arith.constant dense<0.000000e+00> : vector<2x32xf32>
    %166 = tpu.matmul %164, %165, %cst_165 {dimension_numbers = #tpu.dot_dimension_numbers<[1], [0], [0], [1], [0, 0, 1, 1], [], []>} : vector<2x16xf32>, vector<16x32xf32>, vector<2x32xf32> -> vector<2x32xf32>
    %167 = arith.addf %163, %166 : vector<2x32xf32>
    %c42_166 = arith.constant 42 : index
    %c0_167 = arith.constant 0 : index
    %168 = vector.load %arg10[%c42_166, %c0_167] : memref<98x16xf32, #tpu.memory_space<vmem>>, vector<2x16xf32>
    %c64_168 = arith.constant 64 : index
    %c0_169 = arith.constant 0 : index
    %169 = vector.load %arg3[%c64_168, %c0_169] : memref<256x32xf32, #tpu.memory_space<vmem>>, vector<16x32xf32>
    %cst_170 = arith.constant dense<0.000000e+00> : vector<2x32xf32>
    %170 = tpu.matmul %168, %169, %cst_170 {dimension_numbers = #tpu.dot_dimension_numbers<[1], [0], [0], [1], [0, 0, 1, 1], [], []>} : vector<2x16xf32>, vector<16x32xf32>, vector<2x32xf32> -> vector<2x32xf32>
    %171 = arith.addf %167, %170 : vector<2x32xf32>
    %c44_171 = arith.constant 44 : index
    %c0_172 = arith.constant 0 : index
    %172 = vector.load %arg10[%c44_171, %c0_172] : memref<98x16xf32, #tpu.memory_space<vmem>>, vector<2x16xf32>
    %c80_173 = arith.constant 80 : index
    %c0_174 = arith.constant 0 : index
    %173 = vector.load %arg3[%c80_173, %c0_174] : memref<256x32xf32, #tpu.memory_space<vmem>>, vector<16x32xf32>
    %cst_175 = arith.constant dense<0.000000e+00> : vector<2x32xf32>
    %174 = tpu.matmul %172, %173, %cst_175 {dimension_numbers = #tpu.dot_dimension_numbers<[1], [0], [0], [1], [0, 0, 1, 1], [], []>} : vector<2x16xf32>, vector<16x32xf32>, vector<2x32xf32> -> vector<2x32xf32>
    %175 = arith.addf %171, %174 : vector<2x32xf32>
    %c46_176 = arith.constant 46 : index
    %c0_177 = arith.constant 0 : index
    %176 = vector.load %arg10[%c46_176, %c0_177] : memref<98x16xf32, #tpu.memory_space<vmem>>, vector<2x16xf32>
    %c96_178 = arith.constant 96 : index
    %c0_179 = arith.constant 0 : index
    %177 = vector.load %arg3[%c96_178, %c0_179] : memref<256x32xf32, #tpu.memory_space<vmem>>, vector<16x32xf32>
    %cst_180 = arith.constant dense<0.000000e+00> : vector<2x32xf32>
    %178 = tpu.matmul %176, %177, %cst_180 {dimension_numbers = #tpu.dot_dimension_numbers<[1], [0], [0], [1], [0, 0, 1, 1], [], []>} : vector<2x16xf32>, vector<16x32xf32>, vector<2x32xf32> -> vector<2x32xf32>
    %179 = arith.addf %175, %178 : vector<2x32xf32>
    %c48_181 = arith.constant 48 : index
    %c0_182 = arith.constant 0 : index
    %180 = vector.load %arg10[%c48_181, %c0_182] : memref<98x16xf32, #tpu.memory_space<vmem>>, vector<2x16xf32>
    %c112_183 = arith.constant 112 : index
    %c0_184 = arith.constant 0 : index
    %181 = vector.load %arg3[%c112_183, %c0_184] : memref<256x32xf32, #tpu.memory_space<vmem>>, vector<16x32xf32>
    %cst_185 = arith.constant dense<0.000000e+00> : vector<2x32xf32>
    %182 = tpu.matmul %180, %181, %cst_185 {dimension_numbers = #tpu.dot_dimension_numbers<[1], [0], [0], [1], [0, 0, 1, 1], [], []>} : vector<2x16xf32>, vector<16x32xf32>, vector<2x32xf32> -> vector<2x32xf32>
    %183 = arith.addf %179, %182 : vector<2x32xf32>
    %c56 = arith.constant 56 : index
    %c0_186 = arith.constant 0 : index
    %184 = vector.load %arg10[%c56, %c0_186] : memref<98x16xf32, #tpu.memory_space<vmem>>, vector<2x16xf32>
    %c128_187 = arith.constant 128 : index
    %c0_188 = arith.constant 0 : index
    %185 = vector.load %arg3[%c128_187, %c0_188] : memref<256x32xf32, #tpu.memory_space<vmem>>, vector<16x32xf32>
    %cst_189 = arith.constant dense<0.000000e+00> : vector<2x32xf32>
    %186 = tpu.matmul %184, %185, %cst_189 {dimension_numbers = #tpu.dot_dimension_numbers<[1], [0], [0], [1], [0, 0, 1, 1], [], []>} : vector<2x16xf32>, vector<16x32xf32>, vector<2x32xf32> -> vector<2x32xf32>
    %187 = arith.addf %183, %186 : vector<2x32xf32>
    %c58 = arith.constant 58 : index
    %c0_190 = arith.constant 0 : index
    %188 = vector.load %arg10[%c58, %c0_190] : memref<98x16xf32, #tpu.memory_space<vmem>>, vector<2x16xf32>
    %c144_191 = arith.constant 144 : index
    %c0_192 = arith.constant 0 : index
    %189 = vector.load %arg3[%c144_191, %c0_192] : memref<256x32xf32, #tpu.memory_space<vmem>>, vector<16x32xf32>
    %cst_193 = arith.constant dense<0.000000e+00> : vector<2x32xf32>
    %190 = tpu.matmul %188, %189, %cst_193 {dimension_numbers = #tpu.dot_dimension_numbers<[1], [0], [0], [1], [0, 0, 1, 1], [], []>} : vector<2x16xf32>, vector<16x32xf32>, vector<2x32xf32> -> vector<2x32xf32>
    %191 = arith.addf %187, %190 : vector<2x32xf32>
    %c60 = arith.constant 60 : index
    %c0_194 = arith.constant 0 : index
    %192 = vector.load %arg10[%c60, %c0_194] : memref<98x16xf32, #tpu.memory_space<vmem>>, vector<2x16xf32>
    %c160_195 = arith.constant 160 : index
    %c0_196 = arith.constant 0 : index
    %193 = vector.load %arg3[%c160_195, %c0_196] : memref<256x32xf32, #tpu.memory_space<vmem>>, vector<16x32xf32>
    %cst_197 = arith.constant dense<0.000000e+00> : vector<2x32xf32>
    %194 = tpu.matmul %192, %193, %cst_197 {dimension_numbers = #tpu.dot_dimension_numbers<[1], [0], [0], [1], [0, 0, 1, 1], [], []>} : vector<2x16xf32>, vector<16x32xf32>, vector<2x32xf32> -> vector<2x32xf32>
    %195 = arith.addf %191, %194 : vector<2x32xf32>
    %c62 = arith.constant 62 : index
    %c0_198 = arith.constant 0 : index
    %196 = vector.load %arg10[%c62, %c0_198] : memref<98x16xf32, #tpu.memory_space<vmem>>, vector<2x16xf32>
    %c176_199 = arith.constant 176 : index
    %c0_200 = arith.constant 0 : index
    %197 = vector.load %arg3[%c176_199, %c0_200] : memref<256x32xf32, #tpu.memory_space<vmem>>, vector<16x32xf32>
    %cst_201 = arith.constant dense<0.000000e+00> : vector<2x32xf32>
    %198 = tpu.matmul %196, %197, %cst_201 {dimension_numbers = #tpu.dot_dimension_numbers<[1], [0], [0], [1], [0, 0, 1, 1], [], []>} : vector<2x16xf32>, vector<16x32xf32>, vector<2x32xf32> -> vector<2x32xf32>
    %199 = arith.addf %195, %198 : vector<2x32xf32>
    %c70 = arith.constant 70 : index
    %c0_202 = arith.constant 0 : index
    %200 = vector.load %arg10[%c70, %c0_202] : memref<98x16xf32, #tpu.memory_space<vmem>>, vector<2x16xf32>
    %c192_203 = arith.constant 192 : index
    %c0_204 = arith.constant 0 : index
    %201 = vector.load %arg3[%c192_203, %c0_204] : memref<256x32xf32, #tpu.memory_space<vmem>>, vector<16x32xf32>
    %cst_205 = arith.constant dense<0.000000e+00> : vector<2x32xf32>
    %202 = tpu.matmul %200, %201, %cst_205 {dimension_numbers = #tpu.dot_dimension_numbers<[1], [0], [0], [1], [0, 0, 1, 1], [], []>} : vector<2x16xf32>, vector<16x32xf32>, vector<2x32xf32> -> vector<2x32xf32>
    %203 = arith.addf %199, %202 : vector<2x32xf32>
    %c72 = arith.constant 72 : index
    %c0_206 = arith.constant 0 : index
    %204 = vector.load %arg10[%c72, %c0_206] : memref<98x16xf32, #tpu.memory_space<vmem>>, vector<2x16xf32>
    %c208_207 = arith.constant 208 : index
    %c0_208 = arith.constant 0 : index
    %205 = vector.load %arg3[%c208_207, %c0_208] : memref<256x32xf32, #tpu.memory_space<vmem>>, vector<16x32xf32>
    %cst_209 = arith.constant dense<0.000000e+00> : vector<2x32xf32>
    %206 = tpu.matmul %204, %205, %cst_209 {dimension_numbers = #tpu.dot_dimension_numbers<[1], [0], [0], [1], [0, 0, 1, 1], [], []>} : vector<2x16xf32>, vector<16x32xf32>, vector<2x32xf32> -> vector<2x32xf32>
    %207 = arith.addf %203, %206 : vector<2x32xf32>
    %c74 = arith.constant 74 : index
    %c0_210 = arith.constant 0 : index
    %208 = vector.load %arg10[%c74, %c0_210] : memref<98x16xf32, #tpu.memory_space<vmem>>, vector<2x16xf32>
    %c224_211 = arith.constant 224 : index
    %c0_212 = arith.constant 0 : index
    %209 = vector.load %arg3[%c224_211, %c0_212] : memref<256x32xf32, #tpu.memory_space<vmem>>, vector<16x32xf32>
    %cst_213 = arith.constant dense<0.000000e+00> : vector<2x32xf32>
    %210 = tpu.matmul %208, %209, %cst_213 {dimension_numbers = #tpu.dot_dimension_numbers<[1], [0], [0], [1], [0, 0, 1, 1], [], []>} : vector<2x16xf32>, vector<16x32xf32>, vector<2x32xf32> -> vector<2x32xf32>
    %211 = arith.addf %207, %210 : vector<2x32xf32>
    %c76 = arith.constant 76 : index
    %c0_214 = arith.constant 0 : index
    %212 = vector.load %arg10[%c76, %c0_214] : memref<98x16xf32, #tpu.memory_space<vmem>>, vector<2x16xf32>
    %c240_215 = arith.constant 240 : index
    %c0_216 = arith.constant 0 : index
    %213 = vector.load %arg3[%c240_215, %c0_216] : memref<256x32xf32, #tpu.memory_space<vmem>>, vector<16x32xf32>
    %cst_217 = arith.constant dense<0.000000e+00> : vector<2x32xf32>
    %214 = tpu.matmul %212, %213, %cst_217 {dimension_numbers = #tpu.dot_dimension_numbers<[1], [0], [0], [1], [0, 0, 1, 1], [], []>} : vector<2x16xf32>, vector<16x32xf32>, vector<2x32xf32> -> vector<2x32xf32>
    %215 = arith.addf %211, %214 : vector<2x32xf32>
    %c0_218 = arith.constant 0 : index
    %c0_219 = arith.constant 0 : index
    %216 = vector.load %arg4[%c0_218, %c0_219] : memref<1x32xf32, #tpu.memory_space<vmem>>, vector<1x32xf32>
    %217 = vector.broadcast %216 : vector<1x32xf32> to vector<2x32xf32>
    %218 = arith.addf %215, %217 : vector<2x32xf32>
    %cst_220 = arith.constant 0.000000e+00 : f32
    %219 = vector.broadcast %cst_220 : f32 to vector<2x32xf32>
    %220 = arith.maximumf %218, %219 : vector<2x32xf32>
    %c4_221 = arith.constant 4 : index
    %c0_222 = arith.constant 0 : index
    %221 = vector.load %arg11[%c4_221, %c0_222] : memref<8x32xf32, #tpu.memory_space<vmem>>, vector<2x32xf32>
    tpu.vector_store %arg11[%c4_221, %c0_222], %220 {strides = array<i32>} : memref<8x32xf32, #tpu.memory_space<vmem>>, vector<2x32xf32>,
    %cst_223 = arith.constant 0.000000e+00 : f32
    %222 = vector.broadcast %cst_223 : f32 to vector<2x32xf32>
    %c32_224 = arith.constant 32 : index
    %c0_225 = arith.constant 0 : index
    %223 = vector.load %arg10[%c32_224, %c0_225] : memref<98x16xf32, #tpu.memory_space<vmem>>, vector<2x16xf32>
    %c0_226 = arith.constant 0 : index
    %c0_227 = arith.constant 0 : index
    %224 = vector.load %arg3[%c0_226, %c0_227] : memref<256x32xf32, #tpu.memory_space<vmem>>, vector<16x32xf32>
    %cst_228 = arith.constant dense<0.000000e+00> : vector<2x32xf32>
    %225 = tpu.matmul %223, %224, %cst_228 {dimension_numbers = #tpu.dot_dimension_numbers<[1], [0], [0], [1], [0, 0, 1, 1], [], []>} : vector<2x16xf32>, vector<16x32xf32>, vector<2x32xf32> -> vector<2x32xf32>
    %226 = arith.addf %222, %225 : vector<2x32xf32>
    %c34_229 = arith.constant 34 : index
    %c0_230 = arith.constant 0 : index
    %227 = vector.load %arg10[%c34_229, %c0_230] : memref<98x16xf32, #tpu.memory_space<vmem>>, vector<2x16xf32>
    %c16_231 = arith.constant 16 : index
    %c0_232 = arith.constant 0 : index
    %228 = vector.load %arg3[%c16_231, %c0_232] : memref<256x32xf32, #tpu.memory_space<vmem>>, vector<16x32xf32>
    %cst_233 = arith.constant dense<0.000000e+00> : vector<2x32xf32>
    %229 = tpu.matmul %227, %228, %cst_233 {dimension_numbers = #tpu.dot_dimension_numbers<[1], [0], [0], [1], [0, 0, 1, 1], [], []>} : vector<2x16xf32>, vector<16x32xf32>, vector<2x32xf32> -> vector<2x32xf32>
    %230 = arith.addf %226, %229 : vector<2x32xf32>
    %c36_234 = arith.constant 36 : index
    %c0_235 = arith.constant 0 : index
    %231 = vector.load %arg10[%c36_234, %c0_235] : memref<98x16xf32, #tpu.memory_space<vmem>>, vector<2x16xf32>
    %c32_236 = arith.constant 32 : index
    %c0_237 = arith.constant 0 : index
    %232 = vector.load %arg3[%c32_236, %c0_237] : memref<256x32xf32, #tpu.memory_space<vmem>>, vector<16x32xf32>
    %cst_238 = arith.constant dense<0.000000e+00> : vector<2x32xf32>
    %233 = tpu.matmul %231, %232, %cst_238 {dimension_numbers = #tpu.dot_dimension_numbers<[1], [0], [0], [1], [0, 0, 1, 1], [], []>} : vector<2x16xf32>, vector<16x32xf32>, vector<2x32xf32> -> vector<2x32xf32>
    %234 = arith.addf %230, %233 : vector<2x32xf32>
    %c38_239 = arith.constant 38 : index
    %c0_240 = arith.constant 0 : index
    %235 = vector.load %arg10[%c38_239, %c0_240] : memref<98x16xf32, #tpu.memory_space<vmem>>, vector<2x16xf32>
    %c48_241 = arith.constant 48 : index
    %c0_242 = arith.constant 0 : index
    %236 = vector.load %arg3[%c48_241, %c0_242] : memref<256x32xf32, #tpu.memory_space<vmem>>, vector<16x32xf32>
    %cst_243 = arith.constant dense<0.000000e+00> : vector<2x32xf32>
    %237 = tpu.matmul %235, %236, %cst_243 {dimension_numbers = #tpu.dot_dimension_numbers<[1], [0], [0], [1], [0, 0, 1, 1], [], []>} : vector<2x16xf32>, vector<16x32xf32>, vector<2x32xf32> -> vector<2x32xf32>
    %238 = arith.addf %234, %237 : vector<2x32xf32>
    %c46_244 = arith.constant 46 : index
    %c0_245 = arith.constant 0 : index
    %239 = vector.load %arg10[%c46_244, %c0_245] : memref<98x16xf32, #tpu.memory_space<vmem>>, vector<2x16xf32>
    %c64_246 = arith.constant 64 : index
    %c0_247 = arith.constant 0 : index
    %240 = vector.load %arg3[%c64_246, %c0_247] : memref<256x32xf32, #tpu.memory_space<vmem>>, vector<16x32xf32>
    %cst_248 = arith.constant dense<0.000000e+00> : vector<2x32xf32>
    %241 = tpu.matmul %239, %240, %cst_248 {dimension_numbers = #tpu.dot_dimension_numbers<[1], [0], [0], [1], [0, 0, 1, 1], [], []>} : vector<2x16xf32>, vector<16x32xf32>, vector<2x32xf32> -> vector<2x32xf32>
    %242 = arith.addf %238, %241 : vector<2x32xf32>
    %c48_249 = arith.constant 48 : index
    %c0_250 = arith.constant 0 : index
    %243 = vector.load %arg10[%c48_249, %c0_250] : memref<98x16xf32, #tpu.memory_space<vmem>>, vector<2x16xf32>
    %c80_251 = arith.constant 80 : index
    %c0_252 = arith.constant 0 : index
    %244 = vector.load %arg3[%c80_251, %c0_252] : memref<256x32xf32, #tpu.memory_space<vmem>>, vector<16x32xf32>
    %cst_253 = arith.constant dense<0.000000e+00> : vector<2x32xf32>
    %245 = tpu.matmul %243, %244, %cst_253 {dimension_numbers = #tpu.dot_dimension_numbers<[1], [0], [0], [1], [0, 0, 1, 1], [], []>} : vector<2x16xf32>, vector<16x32xf32>, vector<2x32xf32> -> vector<2x32xf32>
    %246 = arith.addf %242, %245 : vector<2x32xf32>
    %c50_254 = arith.constant 50 : index
    %c0_255 = arith.constant 0 : index
    %247 = vector.load %arg10[%c50_254, %c0_255] : memref<98x16xf32, #tpu.memory_space<vmem>>, vector<2x16xf32>
    %c96_256 = arith.constant 96 : index
    %c0_257 = arith.constant 0 : index
    %248 = vector.load %arg3[%c96_256, %c0_257] : memref<256x32xf32, #tpu.memory_space<vmem>>, vector<16x32xf32>
    %cst_258 = arith.constant dense<0.000000e+00> : vector<2x32xf32>
    %249 = tpu.matmul %247, %248, %cst_258 {dimension_numbers = #tpu.dot_dimension_numbers<[1], [0], [0], [1], [0, 0, 1, 1], [], []>} : vector<2x16xf32>, vector<16x32xf32>, vector<2x32xf32> -> vector<2x32xf32>
    %250 = arith.addf %246, %249 : vector<2x32xf32>
    %c52_259 = arith.constant 52 : index
    %c0_260 = arith.constant 0 : index
    %251 = vector.load %arg10[%c52_259, %c0_260] : memref<98x16xf32, #tpu.memory_space<vmem>>, vector<2x16xf32>
    %c112_261 = arith.constant 112 : index
    %c0_262 = arith.constant 0 : index
    %252 = vector.load %arg3[%c112_261, %c0_262] : memref<256x32xf32, #tpu.memory_space<vmem>>, vector<16x32xf32>
    %cst_263 = arith.constant dense<0.000000e+00> : vector<2x32xf32>
    %253 = tpu.matmul %251, %252, %cst_263 {dimension_numbers = #tpu.dot_dimension_numbers<[1], [0], [0], [1], [0, 0, 1, 1], [], []>} : vector<2x16xf32>, vector<16x32xf32>, vector<2x32xf32> -> vector<2x32xf32>
    %254 = arith.addf %250, %253 : vector<2x32xf32>
    %c60_264 = arith.constant 60 : index
    %c0_265 = arith.constant 0 : index
    %255 = vector.load %arg10[%c60_264, %c0_265] : memref<98x16xf32, #tpu.memory_space<vmem>>, vector<2x16xf32>
    %c128_266 = arith.constant 128 : index
    %c0_267 = arith.constant 0 : index
    %256 = vector.load %arg3[%c128_266, %c0_267] : memref<256x32xf32, #tpu.memory_space<vmem>>, vector<16x32xf32>
    %cst_268 = arith.constant dense<0.000000e+00> : vector<2x32xf32>
    %257 = tpu.matmul %255, %256, %cst_268 {dimension_numbers = #tpu.dot_dimension_numbers<[1], [0], [0], [1], [0, 0, 1, 1], [], []>} : vector<2x16xf32>, vector<16x32xf32>, vector<2x32xf32> -> vector<2x32xf32>
    %258 = arith.addf %254, %257 : vector<2x32xf32>
    %c62_269 = arith.constant 62 : index
    %c0_270 = arith.constant 0 : index
    %259 = vector.load %arg10[%c62_269, %c0_270] : memref<98x16xf32, #tpu.memory_space<vmem>>, vector<2x16xf32>
    %c144_271 = arith.constant 144 : index
    %c0_272 = arith.constant 0 : index
    %260 = vector.load %arg3[%c144_271, %c0_272] : memref<256x32xf32, #tpu.memory_space<vmem>>, vector<16x32xf32>
    %cst_273 = arith.constant dense<0.000000e+00> : vector<2x32xf32>
    %261 = tpu.matmul %259, %260, %cst_273 {dimension_numbers = #tpu.dot_dimension_numbers<[1], [0], [0], [1], [0, 0, 1, 1], [], []>} : vector<2x16xf32>, vector<16x32xf32>, vector<2x32xf32> -> vector<2x32xf32>
    %262 = arith.addf %258, %261 : vector<2x32xf32>
    %c64_274 = arith.constant 64 : index
    %c0_275 = arith.constant 0 : index
    %263 = vector.load %arg10[%c64_274, %c0_275] : memref<98x16xf32, #tpu.memory_space<vmem>>, vector<2x16xf32>
    %c160_276 = arith.constant 160 : index
    %c0_277 = arith.constant 0 : index
    %264 = vector.load %arg3[%c160_276, %c0_277] : memref<256x32xf32, #tpu.memory_space<vmem>>, vector<16x32xf32>
    %cst_278 = arith.constant dense<0.000000e+00> : vector<2x32xf32>
    %265 = tpu.matmul %263, %264, %cst_278 {dimension_numbers = #tpu.dot_dimension_numbers<[1], [0], [0], [1], [0, 0, 1, 1], [], []>} : vector<2x16xf32>, vector<16x32xf32>, vector<2x32xf32> -> vector<2x32xf32>
    %266 = arith.addf %262, %265 : vector<2x32xf32>
    %c66 = arith.constant 66 : index
    %c0_279 = arith.constant 0 : index
    %267 = vector.load %arg10[%c66, %c0_279] : memref<98x16xf32, #tpu.memory_space<vmem>>, vector<2x16xf32>
    %c176_280 = arith.constant 176 : index
    %c0_281 = arith.constant 0 : index
    %268 = vector.load %arg3[%c176_280, %c0_281] : memref<256x32xf32, #tpu.memory_space<vmem>>, vector<16x32xf32>
    %cst_282 = arith.constant dense<0.000000e+00> : vector<2x32xf32>
    %269 = tpu.matmul %267, %268, %cst_282 {dimension_numbers = #tpu.dot_dimension_numbers<[1], [0], [0], [1], [0, 0, 1, 1], [], []>} : vector<2x16xf32>, vector<16x32xf32>, vector<2x32xf32> -> vector<2x32xf32>
    %270 = arith.addf %266, %269 : vector<2x32xf32>
    %c74_283 = arith.constant 74 : index
    %c0_284 = arith.constant 0 : index
    %271 = vector.load %arg10[%c74_283, %c0_284] : memref<98x16xf32, #tpu.memory_space<vmem>>, vector<2x16xf32>
    %c192_285 = arith.constant 192 : index
    %c0_286 = arith.constant 0 : index
    %272 = vector.load %arg3[%c192_285, %c0_286] : memref<256x32xf32, #tpu.memory_space<vmem>>, vector<16x32xf32>
    %cst_287 = arith.constant dense<0.000000e+00> : vector<2x32xf32>
    %273 = tpu.matmul %271, %272, %cst_287 {dimension_numbers = #tpu.dot_dimension_numbers<[1], [0], [0], [1], [0, 0, 1, 1], [], []>} : vector<2x16xf32>, vector<16x32xf32>, vector<2x32xf32> -> vector<2x32xf32>
    %274 = arith.addf %270, %273 : vector<2x32xf32>
    %c76_288 = arith.constant 76 : index
    %c0_289 = arith.constant 0 : index
    %275 = vector.load %arg10[%c76_288, %c0_289] : memref<98x16xf32, #tpu.memory_space<vmem>>, vector<2x16xf32>
    %c208_290 = arith.constant 208 : index
    %c0_291 = arith.constant 0 : index
    %276 = vector.load %arg3[%c208_290, %c0_291] : memref<256x32xf32, #tpu.memory_space<vmem>>, vector<16x32xf32>
    %cst_292 = arith.constant dense<0.000000e+00> : vector<2x32xf32>
    %277 = tpu.matmul %275, %276, %cst_292 {dimension_numbers = #tpu.dot_dimension_numbers<[1], [0], [0], [1], [0, 0, 1, 1], [], []>} : vector<2x16xf32>, vector<16x32xf32>, vector<2x32xf32> -> vector<2x32xf32>
    %278 = arith.addf %274, %277 : vector<2x32xf32>
    %c78 = arith.constant 78 : index
    %c0_293 = arith.constant 0 : index
    %279 = vector.load %arg10[%c78, %c0_293] : memref<98x16xf32, #tpu.memory_space<vmem>>, vector<2x16xf32>
    %c224_294 = arith.constant 224 : index
    %c0_295 = arith.constant 0 : index
    %280 = vector.load %arg3[%c224_294, %c0_295] : memref<256x32xf32, #tpu.memory_space<vmem>>, vector<16x32xf32>
    %cst_296 = arith.constant dense<0.000000e+00> : vector<2x32xf32>
    %281 = tpu.matmul %279, %280, %cst_296 {dimension_numbers = #tpu.dot_dimension_numbers<[1], [0], [0], [1], [0, 0, 1, 1], [], []>} : vector<2x16xf32>, vector<16x32xf32>, vector<2x32xf32> -> vector<2x32xf32>
    %282 = arith.addf %278, %281 : vector<2x32xf32>
    %c80_297 = arith.constant 80 : index
    %c0_298 = arith.constant 0 : index
    %283 = vector.load %arg10[%c80_297, %c0_298] : memref<98x16xf32, #tpu.memory_space<vmem>>, vector<2x16xf32>
    %c240_299 = arith.constant 240 : index
    %c0_300 = arith.constant 0 : index
    %284 = vector.load %arg3[%c240_299, %c0_300] : memref<256x32xf32, #tpu.memory_space<vmem>>, vector<16x32xf32>
    %cst_301 = arith.constant dense<0.000000e+00> : vector<2x32xf32>
    %285 = tpu.matmul %283, %284, %cst_301 {dimension_numbers = #tpu.dot_dimension_numbers<[1], [0], [0], [1], [0, 0, 1, 1], [], []>} : vector<2x16xf32>, vector<16x32xf32>, vector<2x32xf32> -> vector<2x32xf32>
    %286 = arith.addf %282, %285 : vector<2x32xf32>
    %c0_302 = arith.constant 0 : index
    %c0_303 = arith.constant 0 : index
    %287 = vector.load %arg4[%c0_302, %c0_303] : memref<1x32xf32, #tpu.memory_space<vmem>>, vector<1x32xf32>
    %288 = vector.broadcast %287 : vector<1x32xf32> to vector<2x32xf32>
    %289 = arith.addf %286, %288 : vector<2x32xf32>
    %cst_304 = arith.constant 0.000000e+00 : f32
    %290 = vector.broadcast %cst_304 : f32 to vector<2x32xf32>
    %291 = arith.maximumf %289, %290 : vector<2x32xf32>
    %c6_305 = arith.constant 6 : index
    %c0_306 = arith.constant 0 : index
    %292 = vector.load %arg11[%c6_305, %c0_306] : memref<8x32xf32, #tpu.memory_space<vmem>>, vector<2x32xf32>
    tpu.vector_store %arg11[%c6_305, %c0_306], %291 {strides = array<i32>} : memref<8x32xf32, #tpu.memory_space<vmem>>, vector<2x32xf32>,
    %cst_307 = arith.constant 0.000000e+00 : f32
    %293 = vector.broadcast %cst_307 : f32 to vector<2x64xf32>
    %c0_308 = arith.constant 0 : index
    %c0_309 = arith.constant 0 : index
    %294 = vector.load %arg11[%c0_308, %c0_309] : memref<8x32xf32, #tpu.memory_space<vmem>>, vector<2x32xf32>
    %c0_310 = arith.constant 0 : index
    %c0_311 = arith.constant 0 : index
    %295 = vector.load %arg5[%c0_310, %c0_311] : memref<128x64xf32, #tpu.memory_space<vmem>>, vector<32x64xf32>
    %cst_312 = arith.constant dense<0.000000e+00> : vector<2x64xf32>
    %296 = tpu.matmul %294, %295, %cst_312 {dimension_numbers = #tpu.dot_dimension_numbers<[1], [0], [0], [1], [0, 0, 1, 1], [], []>} : vector<2x32xf32>, vector<32x64xf32>, vector<2x64xf32> -> vector<2x64xf32>
    %297 = arith.addf %293, %296 : vector<2x64xf32>
    %c2_313 = arith.constant 2 : index
    %c0_314 = arith.constant 0 : index
    %298 = vector.load %arg11[%c2_313, %c0_314] : memref<8x32xf32, #tpu.memory_space<vmem>>, vector<2x32xf32>
    %c32_315 = arith.constant 32 : index
    %c0_316 = arith.constant 0 : index
    %299 = vector.load %arg5[%c32_315, %c0_316] : memref<128x64xf32, #tpu.memory_space<vmem>>, vector<32x64xf32>
    %cst_317 = arith.constant dense<0.000000e+00> : vector<2x64xf32>
    %300 = tpu.matmul %298, %299, %cst_317 {dimension_numbers = #tpu.dot_dimension_numbers<[1], [0], [0], [1], [0, 0, 1, 1], [], []>} : vector<2x32xf32>, vector<32x64xf32>, vector<2x64xf32> -> vector<2x64xf32>
    %301 = arith.addf %297, %300 : vector<2x64xf32>
    %c4_318 = arith.constant 4 : index
    %c0_319 = arith.constant 0 : index
    %302 = vector.load %arg11[%c4_318, %c0_319] : memref<8x32xf32, #tpu.memory_space<vmem>>, vector<2x32xf32>
    %c64_320 = arith.constant 64 : index
    %c0_321 = arith.constant 0 : index
    %303 = vector.load %arg5[%c64_320, %c0_321] : memref<128x64xf32, #tpu.memory_space<vmem>>, vector<32x64xf32>
    %cst_322 = arith.constant dense<0.000000e+00> : vector<2x64xf32>
    %304 = tpu.matmul %302, %303, %cst_322 {dimension_numbers = #tpu.dot_dimension_numbers<[1], [0], [0], [1], [0, 0, 1, 1], [], []>} : vector<2x32xf32>, vector<32x64xf32>, vector<2x64xf32> -> vector<2x64xf32>
    %305 = arith.addf %301, %304 : vector<2x64xf32>
    %c6_323 = arith.constant 6 : index
    %c0_324 = arith.constant 0 : index
    %306 = vector.load %arg11[%c6_323, %c0_324] : memref<8x32xf32, #tpu.memory_space<vmem>>, vector<2x32xf32>
    %c96_325 = arith.constant 96 : index
    %c0_326 = arith.constant 0 : index
    %307 = vector.load %arg5[%c96_325, %c0_326] : memref<128x64xf32, #tpu.memory_space<vmem>>, vector<32x64xf32>
    %cst_327 = arith.constant dense<0.000000e+00> : vector<2x64xf32>
    %308 = tpu.matmul %306, %307, %cst_327 {dimension_numbers = #tpu.dot_dimension_numbers<[1], [0], [0], [1], [0, 0, 1, 1], [], []>} : vector<2x32xf32>, vector<32x64xf32>, vector<2x64xf32> -> vector<2x64xf32>
    %309 = arith.addf %305, %308 : vector<2x64xf32>
    %c0_328 = arith.constant 0 : index
    %c0_329 = arith.constant 0 : index
    %310 = vector.load %arg6[%c0_328, %c0_329] : memref<1x64xf32, #tpu.memory_space<vmem>>, vector<1x64xf32>
    %311 = vector.broadcast %310 : vector<1x64xf32> to vector<2x64xf32>
    %312 = arith.addf %309, %311 : vector<2x64xf32>
    %cst_330 = arith.constant 0.000000e+00 : f32
    %313 = vector.broadcast %cst_330 : f32 to vector<2x64xf32>
    %314 = arith.maximumf %312, %313 : vector<2x64xf32>
    %c0_331 = arith.constant 0 : index
    %c0_332 = arith.constant 0 : index
    %315 = vector.load %arg7[%c0_331, %c0_332] : memref<64x7xf32, #tpu.memory_space<vmem>>, vector<64x7xf32>
    %cst_333 = arith.constant dense<0.000000e+00> : vector<2x7xf32>
    %316 = tpu.matmul %314, %315, %cst_333 {dimension_numbers = #tpu.dot_dimension_numbers<[1], [0], [0], [1], [0, 0, 1, 1], [], []>} : vector<2x64xf32>, vector<64x7xf32>, vector<2x7xf32> -> vector<2x7xf32>
    %c0_334 = arith.constant 0 : index
    %c0_335 = arith.constant 0 : index
    %317 = vector.load %arg8[%c0_334, %c0_335] : memref<1x7xf32, #tpu.memory_space<vmem>>, vector<1x7xf32>
    %318 = vector.broadcast %317 : vector<1x7xf32> to vector<2x7xf32>
    %319 = arith.addf %316, %318 : vector<2x7xf32>
    %c0_336 = arith.constant 0 : index
    %c0_337 = arith.constant 0 : index
    %320 = vector.load %arg9[%c0_336, %c0_337] : memref<2x7xf32, #tpu.memory_space<vmem>>, vector<2x7xf32>
    tpu.vector_store %arg9[%c0_336, %c0_337], %319 {strides = array<i32>} : memref<2x7xf32, #tpu.memory_space<vmem>>, vector<2x7xf32>,
    return
  }
}

</mosaic_0001>

<bundles_post_ra>
// kernel: _forward_impl.1
= control target key start
LH: loop header
LB: loop body
LE: loop exit
PB: predicated region body
PF: predicated region fallthrough
CT: control target
= control target key end

     0   :  { %v6790_v3 = vmov 0.0|0.0   ;;  %vm90_vm0 = vcmask 523264   ;;  %s7684_s0 = inlined_call_operand.vmem [shape: f32[98,192], index: 0, kind: input, shape index: {}]   ;;  %s7685_s1 = inlined_call_operand.vmem [shape: f32[192,16], index: 1, kind: input, shape index: {}]   ;;  %s7686_s2 = inlined_call_operand.vmem [shape: f32[1,16], index: 2, kind: input, shape index: {}]   ;;  %s7687_s3 = inlined_call_operand.vmem [shape: f32[256,32], index: 3, kind: input, shape index: {}]   ;;  %s7688_s4 = inlined_call_operand.vmem [shape: f32[1,32], index: 4, kind: input, shape index: {}]   ;;  %s7689_s5 = inlined_call_operand.vmem [shape: f32[128,64], index: 5, kind: input, shape index: {}]   ;;  %s7690_s6 = inlined_call_operand.vmem [shape: f32[1,64], index: 6, kind: input, shape index: {}]   ;;  %s7691_s7 = inlined_call_operand.vmem [shape: f32[64,7], index: 7, kind: input, shape index: {}]   ;;  %s7692_s8 = inlined_call_operand.vmem [shape: f32[1,7], index: 8, kind: input, shape index: {}]   ;;  %s7693_s9 = inlined_call_operand.hbm [shape: f32[2,7], index: 9, kind: output, shape index: {}]  }
   0x1   :  { %v59_v0 = vld [vmem:[%s7685_s1] sm:$0xff]  ;;  %v60_v1 = vld [vmem:[%s7685_s1 + $0x8] sm:$0xff]  ;;  %v61_v2 = vld [vmem:[%s7685_s1 + $0x10] sm:$0xff]  ;;  %6498 = vmatprep.subr.bf16.mxu0 %v6790_v3  ;;  %6534 = vmatprep.subr.bf16.mxu1 %v6790_v3 }
   0x2   :  { %v6499_v4 = vpack.c.bf16 %v60_v1, %v59_v0  ;;  %v62_v5 = vld [vmem:[%s7685_s1 + $0x18] sm:$0xff]  ;;  %v63_v7 = vld [vmem:[%s7685_s1 + $0x20] sm:$0xff]  ;;  %v64_v8 = vld [vmem:[%s7685_s1 + $0x28] sm:$0xff] }
   0x3   :  { %v6502_v6 = vpack.c.bf16 %v62_v5, %v61_v2  ;;  %v6505_v9 = vpack.c.bf16 %v64_v8, %v63_v7  ;;  %v65_v10 = vld [vmem:[%s7685_s1 + $0x30] sm:$0xff]  ;;  %v66_v11 = vld [vmem:[%s7685_s1 + $0x38] sm:$0xff]  ;;  %v34_v12 = vld [vmem:[%s7684_s0 + $0x8] sm:$0xff] }
   0x4   :  { %6500 = vmatpush1.bf16.msra.mxu0 %v6499_v4  ;;  %5678 = vmatprep.mubr.msk.f32.mxu0 %vm90_vm0, %v34_v12  ;;  %v6508_v13 = vpack.c.bf16 %v66_v11, %v65_v10  ;;  %v67_v14 = vld [vmem:[%s7685_s1 + $0x40] sm:$0xff]  ;;  %v68_v15 = vld [vmem:[%s7685_s1 + $0x48] sm:$0xff] }
   0x5   :  { %6501 = vmatprep.subr.bf16.mxu0 %v6790_v3  ;;  %v6511_v16 = vpack.c.bf16 %v68_v15, %v67_v14 }
   0x8   :  { %6503 = vmatpush1.bf16.msra.mxu0 %v6502_v6 }
   0x9   :  { %6504 = vmatprep.subr.bf16.mxu0 %v6790_v3 }
   0xc   :  { %6506 = vmatpush1.bf16.msra.mxu0 %v6505_v9 }
   0xd   :  { %6507 = vmatprep.subr.bf16.mxu0 %v6790_v3 }
  0x10   :  { %6509 = vmatpush1.bf16.msra.mxu0 %v6508_v13 }
  0x11   :  { %14 = vsyncpa [#allocation5], 0  ;;  %6510 = vmatprep.subr.bf16.mxu0 %v6790_v3  ;;  %v69_v17 = vld [vmem:[%s7685_s1 + $0x50] sm:$0xff]  ;;  %v70_v18 = vld [vmem:[%s7685_s1 + $0x58] sm:$0xff]  ;;  %vm6791_vm1 = vmmov 0   ;;  %v6792_v62 = vmov 0.0  }
  0x12   :  { %v6514_v19 = vpack.c.bf16 %v70_v18, %v69_v17  ;;  %v71_v20 = vld [vmem:[%s7685_s1 + $0x60] sm:$0xff]  ;;  %v72_v21 = vld [vmem:[%s7685_s1 + $0x68] sm:$0xff]  ;;  %v73_v23 = vld [vmem:[%s7685_s1 + $0x70] sm:$0xff]  ;;  %5991 = vmatprep.mubr.msk.f32.mxu1 %vm6791_vm1, %v6792_v62  ;;  %vm273_vm2 = vcmask 130048   ;;  %vm1527_vm3 = vcmask 254976   ;;  %vm5259_vm4 = vcmask 261120  }
  0x13   :  { %v6517_v22 = vpack.c.bf16 %v72_v21, %v71_v20  ;;  %v74_v24 = vld [vmem:[%s7685_s1 + $0x78] sm:$0xff]  ;;  %v75_v26 = vld [vmem:[%s7685_s1 + $0x80] sm:$0xff]  ;;  %v76_v27 = vld [vmem:[%s7685_s1 + $0x88] sm:$0xff]  ;;  %vm5661_vm5 = vcmask 50176  }
  0x14   :  { %6512 = vmatpush1.bf16.msra.mxu0 %v6511_v16  ;;  %v6520_v25 = vpack.c.bf16 %v74_v24, %v73_v23  ;;  %v6523_v28 = vpack.c.bf16 %v76_v27, %v75_v26  ;;  %v77_v29 = vld [vmem:[%s7685_s1 + $0x90] sm:$0xff]  ;;  %v78_v30 = vld [vmem:[%s7685_s1 + $0x98] sm:$0xff]  ;;  %v79_v32 = vld [vmem:[%s7685_s1 + $0xa0] sm:$0xff] }
  0x15   :  { %6513 = vmatprep.subr.bf16.mxu0 %v6790_v3  ;;  %v6526_v31 = vpack.c.bf16 %v78_v30, %v77_v29  ;;  %v80_v33 = vld [vmem:[%s7685_s1 + $0xa8] sm:$0xff]  ;;  %v81_v35 = vld [vmem:[%s7685_s1 + $0xb0] sm:$0xff]  ;;  %v82_v36 = vld [vmem:[%s7685_s1 + $0xb8] sm:$0xff] }
  0x16   :  { %v6529_v34 = vpack.c.bf16 %v80_v33, %v79_v32  ;;  %v6532_v37 = vpack.c.bf16 %v82_v36, %v81_v35  ;;  %v33_v38 = vld [vmem:[%s7684_s0] sm:$0xff]  ;;  %v36_v39 = vld [vmem:[%s7684_s0 + $0x18] sm:$0xff]  ;;  %v35_v40 = vld [vmem:[%s7684_s0 + $0x10] sm:$0xff] }
  0x17   :  { %v38_v41 = vld [vmem:[%s7684_s0 + $0x28] sm:$0xff]  ;;  %v37_v42 = vld [vmem:[%s7684_s0 + $0x20] sm:$0xff]  ;;  %v40_v43 = vld [vmem:[%s7684_s0 + $0x38] sm:$0xff] }
  0x18   :  { %6515 = vmatpush1.bf16.msra.mxu0 %v6514_v19  ;;  %v39_v44 = vld [vmem:[%s7684_s0 + $0x30] sm:$0xff]  ;;  %v42_v45 = vld [vmem:[%s7684_s0 + $0x48] sm:$0xff]  ;;  %v41_v46 = vld [vmem:[%s7684_s0 + $0x40] sm:$0xff] }
  0x19   :  { %6516 = vmatprep.subr.bf16.mxu0 %v6790_v3  ;;  %v44_v47 = vld [vmem:[%s7684_s0 + $0x58] sm:$0xff]  ;;  %v43_v48 = vld [vmem:[%s7684_s0 + $0x50] sm:$0xff]  ;;  %v46_v49 = vld [vmem:[%s7684_s0 + $0x68] sm:$0xff] }
  0x1a   :  { %v45_v50 = vld [vmem:[%s7684_s0 + $0x60] sm:$0xff]  ;;  %v48_v51 = vld [vmem:[%s7684_s0 + $0x78] sm:$0xff]  ;;  %v47_v52 = vld [vmem:[%s7684_s0 + $0x70] sm:$0xff] }
  0x1b   :  { %v50_v53 = vld [vmem:[%s7684_s0 + $0x88] sm:$0xff]  ;;  %v49_v54 = vld [vmem:[%s7684_s0 + $0x80] sm:$0xff]  ;;  %v52_v55 = vld [vmem:[%s7684_s0 + $0x98] sm:$0xff] }
  0x1c   :  { %6518 = vmatpush1.bf16.msra.mxu0 %v6517_v22  ;;  %v51_v56 = vld [vmem:[%s7684_s0 + $0x90] sm:$0xff]  ;;  %v54_v57 = vld [vmem:[%s7684_s0 + $0xa8] sm:$0xff]  ;;  %v53_v58 = vld [vmem:[%s7684_s0 + $0xa0] sm:$0xff] }
  0x1d   :  { %6519 = vmatprep.subr.bf16.mxu0 %v6790_v3  ;;  %v292_v59 = vld [vmem:[%s7687_s3 + $0x10] sm:$0xff]  ;;  %v293_v60 = vld [vmem:[%s7687_s3 + $0x18] sm:$0xff]  ;;  %v58_v1 = vld [vmem:[%s7684_s0 + $0xc8] sm:$0x3] }
  0x1e   :  { %v7013_v61 = vpack.c.bf16 %v293_v60, %v292_v59  ;;  %v56_v63 = vld [vmem:[%s7684_s0 + $0xb8] sm:$0xff]  ;;  %v55_v0 = vld [vmem:[%s7684_s0 + $0xb0] sm:$0xff]  ;;  %v57_v2 = vld [vmem:[%s7684_s0 + $0xc0] sm:$0x3] }
  0x1f   :  { %v2144_v4 = vld [vmem:[%s7687_s3 + $0x80] sm:$0xff]  ;;  %v2145_v5 = vld [vmem:[%s7687_s3 + $0x88] sm:$0xff]  ;;  %v519_v32 = vld [vmem:[%s7687_s3 + $0x38] sm:$0xff] }
  0x20   :  { %6521 = vmatpush1.bf16.msra.mxu0 %v6520_v25  ;;  %6536 = vmatpush3.bf16.msra.mxu1 %v7013_v61  ;;  %v7039_v6 = vpack.c.bf16 %v2145_v5, %v2144_v4  ;;  %v7048_v7 = vld [vmem:[%s7686_s2] ss:$0 sm:$0xff]  ;;  %v290_v17 = vld [vmem:[%s7687_s3 + $0x8] sm:$0xff] }
  0x21   :  { %6522 = vmatprep.subr.bf16.mxu0 %v6790_v3  ;;  %6537 = vmatprep.subr.bf16.mxu1 %v6790_v3  ;;  %v289_v16 = vld [vmem:[%s7687_s3] sm:$0xff]  ;;  %v442_v24 = vld [vmem:[%s7687_s3 + $0x28] sm:$0xff] }
  0x22   :  { %v7061_v21 = vpack.c.bf16 %v290_v17, %v289_v16  ;;  %v441_v23 = vld [vmem:[%s7687_s3 + $0x20] sm:$0xff]  ;;  %v750_v60 = vld [vmem:[%s7687_s3 + $0x68] sm:$0xff] }
  0x23   :  { %v7075_v29 = vpack.c.bf16 %v442_v24, %v441_v23 }
  0x24   :  { %6524 = vmatpush1.bf16.msra.mxu0 %v6523_v28 }
  0x25   :  { %6525 = vmatprep.subr.bf16.mxu0 %v6790_v3 }
  0x28   :  { %6527 = vmatpush1.bf16.msra.mxu0 %v6526_v31  ;;  %v518_v31 = vld [vmem:[%s7687_s3 + $0x30] sm:$0xff] }
  0x29   :  { %6528 = vmatprep.subr.bf16.mxu0 %v6790_v3 }
  0x2c   :  { %6530 = vmatpush1.bf16.msra.mxu0 %v6529_v34 }
  0x2d   :  { %6531 = vmatprep.subr.bf16.mxu0 %v6790_v3 }
  0x30   :  { %6533 = vmatpush1.bf16.msra.mxu0 %v6532_v37  ;;  %v7090_v37 = vpack.c.bf16 %v519_v32, %v518_v31  ;;  %v980_v31 = vld [vmem:[%s7687_s3 + $0x90] sm:$0xff]  ;;  %v981_v32 = vld [vmem:[%s7687_s3 + $0x98] sm:$0xff] }
  0x31   :  { %6606 = vmatprep.subr.bf16.mxu0 %v6790_v3 }
  0x33   :  { %195 = vmatmul.mubr.f32.vlgmr.msra.gmra.mrb[0].mxu0 %v33_v38 }
  0x34   :  { %5679 = vmatprep.mubr.msk.f32.mxu0 %vm90_vm0, %v36_v39  ;;  %6608 = vmatpush3.bf16.msra.mxu0 %v7039_v6  ;;  %v595_v39 = vld [vmem:[%s7687_s3 + $0x40] sm:$0xff] }
  0x35   :  { %6612 = vmatprep.subr.bf16.mxu0 %v6790_v3 }
  0x37   :  { %200 = vmatmul.mubr.f32.gmra.mrb[2].mxu0 %v35_v40  ;;  %v596_v40 = vld [vmem:[%s7687_s3 + $0x48] sm:$0xff] }
  0x38   :  { %5680 = vmatprep.mubr.msk.f32.mxu0 %vm90_vm0, %v38_v41 }
  0x3b   :  { %205 = vmatmul.mubr.f32.gmra.mrb[4].mxu0 %v37_v42 }
  0x3c   :  { %5681 = vmatprep.mubr.msk.f32.mxu0 %vm90_vm0, %v40_v43 }
  0x3f   :  { %210 = vmatmul.mubr.f32.gmra.mrb[6].mxu0 %v39_v44 }
  0x40   :  { %5682 = vmatprep.mubr.msk.f32.mxu0 %vm90_vm0, %v42_v45  ;;  %v7105_v45 = vpack.c.bf16 %v596_v40, %v595_v39 }
  0x43   :  { %215 = vmatmul.mubr.f32.gmra.mrb[8].mxu0 %v41_v46  ;;  %v672_v46 = vld [vmem:[%s7687_s3 + $0x50] sm:$0xff] }
  0x44   :  { %5683 = vmatprep.mubr.msk.f32.mxu0 %vm90_vm0, %v44_v47 }
  0x47   :  { %220 = vmatmul.mubr.f32.gmra.mrb[10].mxu0 %v43_v48  ;;  %v673_v48 = vld [vmem:[%s7687_s3 + $0x58] sm:$0xff] }
  0x48   :  { %5684 = vmatprep.mubr.msk.f32.mxu0 %vm90_vm0, %v46_v49  ;;  %v2298_v49 = vld [vmem:[%s7687_s3 + $0xa0] sm:$0xff] }
  0x4b   :  { %225 = vmatmul.mubr.f32.gmra.mrb[12].mxu0 %v45_v50  ;;  %v2299_v50 = vld [vmem:[%s7687_s3 + $0xa8] sm:$0xff] }
  0x4c   :  { %5685 = vmatprep.mubr.msk.f32.mxu0 %vm90_vm0, %v48_v51 }
  0x4f   :  { %230 = vmatmul.mubr.f32.gmra.mrb[14].mxu0 %v47_v52 }
  0x50   :  { %5686 = vmatprep.mubr.msk.f32.mxu0 %vm90_vm0, %v50_v53 }
  0x53   :  { %235 = vmatmul.mubr.f32.gmra.mrb[16].mxu0 %v49_v54 }
  0x54   :  { %5687 = vmatprep.mubr.msk.f32.mxu0 %vm90_vm0, %v52_v55 }
  0x57   :  { %240 = vmatmul.mubr.f32.gmra.mrb[18].mxu0 %v51_v56  ;;  %v7126_v56 = vpack.c.bf16 %v673_v48, %v672_v46 }
  0x58   :  { %5688 = vmatprep.mubr.msk.f32.mxu0 %vm90_vm0, %v54_v57  ;;  %v7128_v57 = vpack.c.bf16 %v2299_v50, %v2298_v49 }
  0x5b   :  { %245 = vmatmul.mubr.f32.gmra.mrb[20].mxu0 %v53_v58  ;;  %v749_v58 = vld [vmem:[%s7687_s3 + $0x60] sm:$0xff] }
  0x5c   :  { %5689 = vmatprep.mubr.msk.f32.mxu0 %vm90_vm0, %v56_v63  ;;  %v2452_v63 = vld [vmem:[%s7687_s3 + $0xc0] sm:$0xff] }
  0x5f   :  { %250 = vmatmul.mubr.f32.gmra.mrb[22].mxu0 %v55_v0  ;;  %v2453_v0 = vld [vmem:[%s7687_s3 + $0xc8] sm:$0xff] }
  0x60   :  { %5690 = vmatprep.mubr.msk.f32.mxu0 %vm90_vm0, %v58_v1 }
  0x63   :  { %255 = vmatmul.mubr.f32.gmra.mrb[24].mxu0 %v57_v2 }
  0x64   :  { %6159 = vmatprep.mubr.msk.f32.mxu0 %vm6791_vm1, %v6792_v62 }
 0x106   :  { %v196_v8 = vpop.f32.mrb[0].mxu0 }
 0x107   :  { %v197_v9 = vadd.f32 %v7048_v7, %v196_v8  ;;  %v198_v10 = vpop.f32.mrb[1].mxu0 }
 0x109   :  { %v260_v11 = vmax.f32 %v197_v9, 0.0  ;;  %v7149_v9 = vpack.c.bf16 %v750_v60, %v749_v58  ;;  %v1442_v60 = vld [vmem:[%s7687_s3 + $0xf0] sm:$0xff] }
 0x10a   :  { %v201_v12 = vpop.f32.mrb[2].mxu0 }
 0x10b   :  { %274 = vst.msk [vmem:[#allocation2] sm:$0xff] %vm273_vm2, %v260_v11  ;;  %v202_v13 = vadd.f32 %v7048_v7, %v201_v12  ;;  %v203_v14 = vpop.f32.mrb[3].mxu0  ;;  %v7151_v11 = vpack.c.bf16 %v2453_v0, %v2452_v63  ;;  %v826_v12 = vld [vmem:[%s7687_s3 + $0x70] sm:$0xff]  ;;  %v1443_v63 = vld [vmem:[%s7687_s3 + $0xf8] sm:$0xff] }
 0x10c   :  { %v2606_v14 = vld [vmem:[%s7687_s3 + $0xe0] sm:$0xff] }
 0x10d   :  { %v261_v15 = vmax.f32 %v202_v13, 0.0  ;;  %v827_v13 = vld [vmem:[%s7687_s3 + $0x78] sm:$0xff] }
 0x10e   :  { %v206_v18 = vpop.f32.mrb[4].mxu0 }
 0x10f   :  { %275 = vst.msk [vmem:[#allocation2 + $0x8] sm:$0xff] %vm273_vm2, %v261_v15  ;;  %v207_v19 = vadd.f32 %v7048_v7, %v206_v18  ;;  %v208_v20 = vpop.f32.mrb[5].mxu0  ;;  %v2607_v15 = vld [vmem:[%s7687_s3 + $0xe8] sm:$0xff] }
 0x110   :  { %v7177_v20 = vpack.c.bf16 %v827_v13, %v826_v12  ;;  %v7179_v23 = vpack.c.bf16 %v2607_v15, %v2606_v14 }
 0x111   :  { %v262_v22 = vmax.f32 %v207_v19, 0.0 }
 0x112   :  { %v291_v25 = vld [vmem:[#allocation2 + $0x2] sm:$0x3]  ;;  %v211_v26 = vpop.f32.mrb[6].mxu0  ;;  %v288_v34 = vld [vmem:[#allocation2] sm:$0x3] }
 0x113   :  { %276 = vst.msk [vmem:[#allocation2 + $0x10] sm:$0xff] %vm273_vm2, %v262_v22  ;;  %5992 = vmatmul.mubr.msk.f32.vlgmr.msra.gmra.mrb[0].mxu1 %vm273_vm2, %v291_v25  ;;  %v212_v27 = vadd.f32 %v7048_v7, %v211_v26  ;;  %v213_v28 = vpop.f32.mrb[7].mxu0  ;;  %v440_v41 = vld [vmem:[#allocation2 + $0x4] sm:$0x3]  ;;  %v517_v51 = vld [vmem:[#allocation2 + $0x6] sm:$0x3] }
 0x114   :  { %6539 = vmatpush3.bf16.msra.mxu1 %v7061_v21  ;;  %5998 = vmatprep.mubr.msk.f32.mxu1 %vm6791_vm1, %v6792_v62 }
 0x115   :  { %v263_v30 = vmax.f32 %v212_v27, 0.0  ;;  %6540 = vmatprep.subr.bf16.mxu1 %v6790_v3 }
 0x116   :  { %v216_v33 = vpop.f32.mrb[8].mxu0  ;;  %v594_v55 = vld [vmem:[#allocation2 + $0xe] sm:$0x3]  ;;  %v1681_v14 = vld [vmem:[#allocation2 + $0x8] sm:$0x3] }
 0x117   :  { %277 = vst.msk [vmem:[#allocation2 + $0x18] sm:$0xff] %vm273_vm2, %v263_v30  ;;  %v217_v35 = vadd.f32 %v7048_v7, %v216_v33  ;;  %5999 = vmatmul.mubr.msk.f32.vlgmr.msra.gmra.mrb[2].mxu1 %vm273_vm2, %v288_v34  ;;  %v218_v36 = vpop.f32.mrb[9].mxu0 }
 0x118   :  { %6542 = vmatpush3.bf16.msra.mxu1 %v7075_v29  ;;  %6005 = vmatprep.mubr.msk.f32.mxu1 %vm6791_vm1, %v6792_v62  ;;  %v7210_v36 = vpack.c.bf16 %v981_v32, %v980_v31 }
 0x119   :  { %v264_v38 = vmax.f32 %v217_v35, 0.0  ;;  %6543 = vmatprep.subr.bf16.mxu1 %v6790_v3 }
 0x11a   :  { %v221_v42 = vpop.f32.mrb[10].mxu0  ;;  %v671_v8 = vld [vmem:[#allocation2 + $0x10] sm:$0x3]  ;;  %v748_v25 = vld [vmem:[#allocation2 + $0x12] sm:$0x3] }
 0x11b   :  { %278 = vst.msk [vmem:[#allocation2 + $0x20] sm:$0xff] %vm273_vm2, %v264_v38  ;;  %6006 = vmatmul.mubr.msk.f32.vlgmr.msra.gmra.mrb[4].mxu1 %vm273_vm2, %v440_v41  ;;  %v222_v43 = vadd.f32 %v7048_v7, %v221_v42  ;;  %v223_v44 = vpop.f32.mrb[11].mxu0  ;;  %v825_v34 = vld [vmem:[#allocation2 + $0x14] sm:$0x3] }
 0x11c   :  { %6545 = vmatpush3.bf16.msra.mxu1 %v7090_v37  ;;  %6012 = vmatprep.mubr.msk.f32.mxu1 %vm6791_vm1, %v6792_v62  ;;  %v1135_v44 = vld [vmem:[%s7687_s3 + $0xb8] sm:$0xff] }
 0x11d   :  { %v265_v47 = vmax.f32 %v222_v43, 0.0  ;;  %6546 = vmatprep.subr.bf16.mxu1 %v6790_v3 }
 0x11e   :  { %v226_v52 = vpop.f32.mrb[12].mxu0  ;;  %v902_v35 = vld [vmem:[#allocation2 + $0x1c] sm:$0x3]  ;;  %v2772_v38 = vld [vmem:[#allocation2 + $0x1e] sm:$0x3] }
 0x11f   :  { %279 = vst.msk [vmem:[#allocation2 + $0x28] sm:$0xff] %vm273_vm2, %v265_v47  ;;  %6013 = vmatmul.mubr.msk.f32.vlgmr.msra.gmra.mrb[6].mxu1 %vm273_vm2, %v517_v51  ;;  %v227_v53 = vadd.f32 %v7048_v7, %v226_v52  ;;  %v228_v54 = vpop.f32.mrb[13].mxu0  ;;  %v979_v46 = vld [vmem:[#allocation2 + $0x1e] sm:$0x3]  ;;  %v1288_v51 = vld [vmem:[%s7687_s3 + $0xd0] sm:$0xff] }
 0x120   :  { %6548 = vmatpush3.bf16.msra.mxu1 %v7105_v45  ;;  %6019 = vmatprep.mubr.msk.f32.mxu1 %vm6791_vm1, %v6792_v62  ;;  %v1289_v52 = vld [vmem:[%s7687_s3 + $0xd8] sm:$0xff] }
 0x121   :  { %v266_v59 = vmax.f32 %v227_v53, 0.0  ;;  %6549 = vmatprep.subr.bf16.mxu1 %v6790_v3  ;;  %v2769_v31 = vld [vmem:[#allocation2 + $0x1c] sm:$0x3] }
 0x122   :  { %v2143_v1 = vld [vmem:[#allocation2 + $0x20] sm:$0x3]  ;;  %v231_v2 = vpop.f32.mrb[14].mxu0  ;;  %v2297_v10 = vld [vmem:[#allocation2 + $0x24] sm:$0x3] }
 0x123   :  { %280 = vst.msk [vmem:[#allocation2 + $0x30] sm:$0xff] %vm273_vm2, %v266_v59  ;;  %6020 = vmatmul.mubr.msk.f32.vlgmr.msra.gmra.mrb[8].mxu1 %vm273_vm2, %v594_v55  ;;  %6160 = vmatmul.mubr.msk.f32.vlgmr.msra.gmra.mrb[26].mxu0 %vm273_vm2, %v2143_v1  ;;  %v232_v4 = vadd.f32 %v7048_v7, %v231_v2  ;;  %v233_v5 = vpop.f32.mrb[15].mxu0  ;;  %v2921_v43 = vld [vmem:[#allocation2 + $0x20] sm:$0x3]  ;;  %v1133_v53 = vld [vmem:[#allocation2 + $0x22] sm:$0x3]  ;;  %v7268_v55 = vpack.c.bf16 %v1289_v52, %v1288_v51 }
 0x124   :  { %6551 = vmatpush3.bf16.msra.mxu1 %v7126_v56  ;;  %6614 = vmatpush3.bf16.msra.mxu0 %v7128_v57  ;;  %v1056_v47 = vld [vmem:[#allocation2 + $0x20] sm:$0x3]  ;;  %v7296_v1 = vpack.c.bf16 %v1443_v63, %v1442_v60  ;;  %v4012_v12 = vld [vmem:[#allocation2 + $0x22] sm:$0x3]  ;;  %v4161_v13 = vld [vmem:[#allocation2 + $0x24] sm:$0x3] }
 0x125   :  { %6026 = vmatprep.mubr.msk.f32.mxu1 %vm6791_vm1, %v6792_v62  ;;  %6552 = vmatprep.subr.bf16.mxu1 %v6790_v3  ;;  %v267_v16 = vmax.f32 %v232_v4, 0.0  ;;  %v2998_v32 = vld [vmem:[#allocation2 + $0x22] sm:$0x3] }
 0x126   :  { %6173 = vmatprep.mubr.msk.f32.mxu0 %vm6791_vm1, %v6792_v62  ;;  %6618 = vmatprep.subr.bf16.mxu0 %v6790_v3  ;;  %v236_v17 = vpop.f32.mrb[16].mxu0  ;;  %v2451_v22 = vld [vmem:[#allocation2 + $0x2e] sm:$0x3]  ;;  %v3075_v49 = vld [vmem:[#allocation2 + $0x2a] sm:$0x3] }
 0x127   :  { %6027 = vmatmul.mubr.msk.f32.vlgmr.msra.gmra.mrb[10].mxu1 %vm273_vm2, %v671_v8  ;;  %6174 = vmatmul.mubr.msk.f32.vlgmr.msra.gmra.mrb[28].mxu0 %vm273_vm2, %v2297_v10  ;;  %281 = vst.msk [vmem:[#allocation2 + $0x38] sm:$0xff] %vm273_vm2, %v267_v16  ;;  %v237_v18 = vadd.f32 %v7048_v7, %v236_v17  ;;  %v238_v19 = vpop.f32.mrb[17].mxu0  ;;  %v3229_v50 = vld [vmem:[#allocation2 + $0x2e] sm:$0x3]  ;;  %v1210_v54 = vld [vmem:[#allocation2 + $0x2a] sm:$0x3] }
 0x128   :  { %6554 = vmatpush3.bf16.msra.mxu1 %v7149_v9  ;;  %6620 = vmatpush3.bf16.msra.mxu0 %v7151_v11  ;;  %v1287_v0 = vld [vmem:[#allocation2 + $0x2c] sm:$0x3]  ;;  %v1364_v4 = vld [vmem:[#allocation2 + $0x2e] sm:$0x3]  ;;  %v1532_v10 = vld [vmem:[#allocation2 + $0x6] sm:$0x3] }
 0x129   :  { %6033 = vmatprep.mubr.msk.f32.mxu1 %vm6791_vm1, %v6792_v62  ;;  %6555 = vmatprep.subr.bf16.mxu1 %v6790_v3  ;;  %v268_v24 = vmax.f32 %v237_v18, 0.0  ;;  %v4315_v15 = vld [vmem:[#allocation2 + $0x2e] sm:$0x3]  ;;  %v1835_v17 = vld [vmem:[#allocation2 + $0x12] sm:$0x3] }
 0x12a   :  { %6187 = vmatprep.mubr.msk.f32.mxu0 %vm6791_vm1, %v6792_v62  ;;  %6624 = vmatprep.subr.bf16.mxu0 %v6790_v3  ;;  %v241_v26 = vpop.f32.mrb[18].mxu0  ;;  %v2605_v28 = vld [vmem:[#allocation2 + $0x32] sm:$0x3]  ;;  %v1441_v5 = vld [vmem:[#allocation2 + $0x30] sm:$0x3] }
 0x12b   :  { %6034 = vmatmul.mubr.msk.f32.vlgmr.msra.gmra.mrb[12].mxu1 %vm273_vm2, %v748_v25  ;;  %6188 = vmatmul.mubr.msk.f32.vlgmr.msra.gmra.mrb[30].mxu0 %vm273_vm2, %v2451_v22  ;;  %282 = vst.msk [vmem:[#allocation2 + $0x40] sm:$0xff] %vm273_vm2, %v268_v24  ;;  %v242_v27 = vadd.f32 %v7048_v7, %v241_v26  ;;  %v243_v30 = vpop.f32.mrb[19].mxu0  ;;  %v4469_v16 = vld [vmem:[#allocation2 + $0x32] sm:$0x3]  ;;  %v1989_v19 = vld [vmem:[#allocation2 + $0x16] sm:$0x3] }
 0x12c   :  { %6557 = vmatpush3.bf16.msra.mxu1 %v7177_v20  ;;  %6626 = vmatpush3.bf16.msra.mxu0 %v7179_v23  ;;  %v2220_v22 = vld [vmem:[#allocation2 + $0x22] sm:$0x3]  ;;  %v2528_v26 = vld [vmem:[#allocation2 + $0x30] sm:$0x3]  ;;  %v2682_v30 = vld [vmem:[#allocation2 + $0x34] sm:$0x3] }
 0x12d   :  { %6040 = vmatprep.mubr.msk.f32.mxu1 %vm6791_vm1, %v6792_v62  ;;  %6558 = vmatprep.subr.bf16.mxu1 %v6790_v3  ;;  %v269_v33 = vmax.f32 %v242_v27, 0.0 }
 0x12e   :  { %6201 = vmatprep.mubr.msk.f32.mxu0 %vm6791_vm1, %v6792_v62  ;;  %6630 = vmatprep.subr.bf16.mxu0 %v6790_v3  ;;  %v246_v39 = vpop.f32.mrb[20].mxu0  ;;  %v3383_v58 = vld [vmem:[#allocation2 + $0x38] sm:$0x3]  ;;  %v3537_v59 = vld [vmem:[#allocation2 + $0x3c] sm:$0x3] }
 0x12f   :  { %6041 = vmatmul.mubr.msk.f32.vlgmr.msra.gmra.mrb[14].mxu1 %vm273_vm2, %v825_v34  ;;  %6202 = vmatmul.mubr.msk.f32.vlgmr.msra.gmra.mrb[32].mxu0 %vm273_vm2, %v2605_v28  ;;  %283 = vst.msk [vmem:[#allocation2 + $0x48] sm:$0xff] %vm273_vm2, %v269_v33  ;;  %v247_v40 = vadd.f32 %v7048_v7, %v246_v39  ;;  %v248_v41 = vpop.f32.mrb[21].mxu0  ;;  %v1134_v7 = vld [vmem:[%s7687_s3 + $0xb0] sm:$0xff]  ;;  %v4623_v18 = vld [vmem:[#allocation2 + $0x3c] sm:$0x3]  ;;  %s6793_s3 = smov [#allocation4]  }
 0x130   :  { %6560 = vmatpush3.bf16.msra.mxu1 %v7039_v6  ;;  %6632 = vmatpush3.bf16.msra.mxu0 %v7013_v61  ;;  %v7240_v48 = vpack.c.bf16 %v1135_v44, %v1134_v7  ;;  %v3152_v33 = vld [vmem:[#allocation2 + $0x2c] sm:$0x3]  ;;  %v3306_v34 = vld [vmem:[#allocation2 + $0x30] sm:$0x3]  ;;  %v4009_v41 = vld [vmem:[#allocation2 + $0x20] sm:$0x3] }
 0x131   :  { %6047 = vmatprep.mubr.msk.f32.mxu1 %vm6791_vm1, %v6792_v62  ;;  %6561 = vmatprep.subr.bf16.mxu1 %v6790_v3  ;;  %v270_v42 = vmax.f32 %v247_v40, 0.0  ;;  %v5255_v7 = vld [vmem:[%s7689_s5 + $0x20] sm:$0xff]  ;;  %v5256_v44 = vld [vmem:[%s7689_s5 + $0x28] sm:$0xff]  ;;  %s5669_s17 = sshll.u32 %s6793_s3, 4  ;;  %s5670_s17 = int_to_ptr.vmem [resolvable:$true] %s5669_s17 }
 0x132   :  { %6215 = vmatprep.mubr.msk.f32.mxu0 %vm6791_vm1, %v6792_v62  ;;  %6636 = vmatprep.subr.bf16.mxu0 %v6790_v3  ;;  %v3691_v2 = vld [vmem:[#allocation2 + $0x46] sm:$0x3]  ;;  %v251_v24 = vpop.f32.mrb[22].mxu0  ;;  %s6766_s18 = scalar_lea.vmem %s5670_s17, 32  ;;  %p6771_p1 = scmp.lt.s32.totalorder %s5670_s17, %s5670_s17 }
 0x133   :  { %6048 = vmatmul.mubr.msk.f32.vlgmr.msra.gmra.mrb[16].mxu1 %vm273_vm2, %v902_v35  ;;  %6216 = vmatmul.mubr.msk.f32.vlgmr.msra.gmra.mrb[34].mxu0 %vm273_vm2, %v2772_v38  ;;  %284 = vst.msk [vmem:[#allocation2 + $0x50] sm:$0xff] %vm273_vm2, %v270_v42  ;;  %v253_v25 = vpop.f32.mrb[23].mxu0  ;;  %v3460_v35 = vld [vmem:[#allocation2 + $0x3a] sm:$0x3]  ;;  %v3614_v38 = vld [vmem:[#allocation2 + $0x3e] sm:$0x3]  ;;  %p6767_p0 = scmp.ne.s32.totalorder %s5670_s17, %s6766_s18  ;;  %p6772_p2 = scmp.lt.s32.totalorder %s6766_s18, %s6766_s18 }
 0x134   :  { %6563 = vmatpush3.bf16.msra.mxu1 %v7210_v36  ;;  %6638 = vmatpush3.bf16.msra.mxu0 %v7075_v29  ;;  %v4238_v42 = vld [vmem:[#allocation2 + $0x26] sm:$0x3] }
 0x135   :  { %6054 = vmatprep.mubr.msk.f32.mxu1 %vm6791_vm1, %v6792_v62  ;;  %6564 = vmatprep.subr.bf16.mxu1 %v6790_v3  ;;  %p6773_p3 = por %p6772_p2, %p6771_p1 }
 0x136   :  { %6229 = vmatprep.mubr.msk.f32.mxu0 %vm6791_vm1, %v6792_v62  ;;  %6642 = vmatprep.subr.bf16.mxu0 %v6790_v3  ;;  %v3845_v8 = vld [vmem:[#allocation2 + $0x4a] sm:$0x3]  ;;  %v256_v27 = vpop.f32.mrb[24].mxu0  ;;  %v3768_v39 = vld [vmem:[#allocation2 + $0x48] sm:$0x3] }
 0x137   :  { %6055 = vmatmul.mubr.msk.f32.vlgmr.msra.gmra.mrb[18].mxu1 %vm273_vm2, %v979_v46  ;;  %6230 = vmatmul.mubr.msk.f32.vlgmr.msra.gmra.mrb[36].mxu0 %vm273_vm2, %v2921_v43  ;;  %v258_v28 = vpop.f32.mrb[25].mxu0  ;;  %v3922_v40 = vld [vmem:[#allocation2 + $0x4c] sm:$0x3]  ;;  %v6727_v46 = vpack.c.bf16 %v5256_v44, %v5255_v7  ;;  %p6774_p4 = pnand %p6773_p3, %p6767_p0 }
 0x138   :  { %6566 = vmatpush3.bf16.msra.mxu1 %v7128_v57  ;;  %6644 = vmatpush3.bf16.msra.mxu0 %v7105_v45 }
 0x139   :  { %6061 = vmatprep.mubr.msk.f32.mxu1 %vm6791_vm1, %v6792_v62  ;;  %6567 = vmatprep.subr.bf16.mxu1 %v6790_v3 }
 0x13a   :  { %6243 = vmatprep.mubr.msk.f32.mxu0 %vm6791_vm1, %v6792_v62  ;;  %6648 = vmatprep.subr.bf16.mxu0 %v6790_v3  ;;  %v5162_v43 = vld [vmem:[#allocation2 + $0x50] sm:$0x3] }
 0x13b   :  { %6062 = vmatmul.mubr.msk.f32.vlgmr.msra.gmra.mrb[20].mxu1 %vm273_vm2, %v1056_v47  ;;  %6244 = vmatmul.mubr.msk.f32.vlgmr.msra.gmra.mrb[38].mxu0 %vm273_vm2, %v3075_v49  ;;  %v5257_v47 = vld [vmem:[%s7689_s5 + $0x30] sm:$0xff] }
 0x13c   :  { %6569 = vmatpush3.bf16.msra.mxu1 %v7240_v48  ;;  %6650 = vmatpush3.bf16.msra.mxu0 %v7149_v9 }
 0x13d   :  { %6068 = vmatprep.mubr.msk.f32.mxu1 %vm6791_vm1, %v6792_v62  ;;  %6570 = vmatprep.subr.bf16.mxu1 %v6790_v3 }
 0x13e   :  { %6257 = vmatprep.mubr.msk.f32.mxu0 %vm6791_vm1, %v6792_v62  ;;  %6654 = vmatprep.subr.bf16.mxu0 %v6790_v3 }
 0x13f   :  { %6069 = vmatmul.mubr.msk.f32.vlgmr.msra.gmra.mrb[22].mxu1 %vm273_vm2, %v1133_v53  ;;  %6258 = vmatmul.mubr.msk.f32.vlgmr.msra.gmra.mrb[40].mxu0 %vm273_vm2, %v3229_v50 }
 0x140   :  { %6572 = vmatpush3.bf16.msra.mxu1 %v7151_v11  ;;  %6656 = vmatpush3.bf16.msra.mxu0 %v7039_v6 }
 0x141   :  { %6075 = vmatprep.mubr.msk.f32.mxu1 %vm6791_vm1, %v6792_v62  ;;  %6573 = vmatprep.subr.bf16.mxu1 %v6790_v3 }
 0x142   :  { %6271 = vmatprep.mubr.msk.f32.mxu0 %vm6791_vm1, %v6792_v62  ;;  %6660 = vmatprep.subr.bf16.mxu0 %v6790_v3 }
 0x143   :  { %6076 = vmatmul.mubr.msk.f32.vlgmr.msra.gmra.mrb[24].mxu1 %vm273_vm2, %v1210_v54  ;;  %6272 = vmatmul.mubr.msk.f32.vlgmr.msra.gmra.mrb[42].mxu0 %vm273_vm2, %v3383_v58 }
 0x144   :  { %6575 = vmatpush3.bf16.msra.mxu1 %v7268_v55  ;;  %6662 = vmatpush3.bf16.msra.mxu0 %v7128_v57 }
 0x145   :  { %6082 = vmatprep.mubr.msk.f32.mxu1 %vm6791_vm1, %v6792_v62  ;;  %6576 = vmatprep.subr.bf16.mxu1 %v6790_v3 }
 0x146   :  { %6285 = vmatprep.mubr.msk.f32.mxu0 %vm6791_vm1, %v6792_v62  ;;  %6666 = vmatprep.subr.bf16.mxu0 %v6790_v3 }
 0x147   :  { %6083 = vmatmul.mubr.msk.f32.vlgmr.msra.gmra.mrb[26].mxu1 %vm273_vm2, %v1287_v0  ;;  %6286 = vmatmul.mubr.msk.f32.vlgmr.msra.gmra.mrb[44].mxu0 %vm273_vm2, %v3537_v59 }
 0x148   :  { %6578 = vmatpush3.bf16.msra.mxu1 %v7179_v23  ;;  %6668 = vmatpush3.bf16.msra.mxu0 %v7151_v11 }
 0x149   :  { %6089 = vmatprep.mubr.msk.f32.mxu1 %vm6791_vm1, %v6792_v62  ;;  %6579 = vmatprep.subr.bf16.mxu1 %v6790_v3 }
 0x14a   :  { %6299 = vmatprep.mubr.msk.f32.mxu0 %vm6791_vm1, %v6792_v62  ;;  %6672 = vmatprep.subr.bf16.mxu0 %v6790_v3 }
 0x14b   :  { %6090 = vmatmul.mubr.msk.f32.vlgmr.msra.gmra.mrb[28].mxu1 %vm273_vm2, %v1364_v4  ;;  %6300 = vmatmul.mubr.msk.f32.vlgmr.msra.gmra.mrb[46].mxu0 %vm273_vm2, %v3691_v2 }
 0x14c   :  { %6581 = vmatpush3.bf16.msra.mxu1 %v7296_v1  ;;  %6674 = vmatpush3.bf16.msra.mxu0 %v7179_v23 }
 0x14d   :  { %6096 = vmatprep.mubr.msk.f32.mxu1 %vm6791_vm1, %v6792_v62  ;;  %6582 = vmatprep.subr.bf16.mxu1 %v6790_v3 }
 0x14e   :  { %6313 = vmatprep.mubr.msk.f32.mxu0 %vm6791_vm1, %v6792_v62  ;;  %6678 = vmatprep.subr.bf16.mxu0 %v6790_v3 }
 0x14f   :  { %6097 = vmatmul.mubr.msk.f32.vlgmr.msra.gmra.mrb[30].mxu1 %vm273_vm2, %v1441_v5  ;;  %6314 = vmatmul.mubr.msk.f32.vlgmr.msra.gmra.mrb[48].mxu0 %vm273_vm2, %v3845_v8 }
 0x150   :  { %6584 = vmatpush3.bf16.msra.mxu1 %v7013_v61  ;;  %6680 = vmatpush3.bf16.msra.mxu0 %v7013_v61  ;;  %v1529_v61 = vld [vmem:[#allocation2 + $0x4] sm:$0x3] }
 0x151   :  { %6103 = vmatprep.mubr.msk.f32.mxu1 %vm6791_vm1, %v6792_v62  ;;  %6585 = vmatprep.subr.bf16.mxu1 %v6790_v3 }
 0x152   :  { %6327 = vmatprep.mubr.msk.f32.mxu0 %vm6791_vm1, %v6792_v62  ;;  %6684 = vmatprep.subr.bf16.mxu0 %v6790_v3 }
 0x153   :  { %6104 = vmatmul.mubr.msk.f32.vlgmr.msra.gmra.mrb[32].mxu1 %vm273_vm2, %v1532_v10  ;;  %6328 = vmatmul.mubr.msk.f32.vlgmr.msra.gmra.mrb[50].mxu0 %vm273_vm2, %v4012_v12  ;;  %v5407_v10 = vld [vmem:[%s7689_s5 + $0x40] sm:$0xff]  ;;  %v5408_v12 = vld [vmem:[%s7689_s5 + $0x48] sm:$0xff] }
 0x154   :  { %6587 = vmatpush3.bf16.msra.mxu1 %v7061_v21  ;;  %6686 = vmatpush3.bf16.msra.mxu0 %v7075_v29 }
 0x155   :  { %6110 = vmatprep.mubr.msk.f32.mxu1 %vm6791_vm1, %v6792_v62  ;;  %6588 = vmatprep.subr.bf16.mxu1 %v6790_v3 }
 0x156   :  { %6341 = vmatprep.mubr.msk.f32.mxu0 %vm6791_vm1, %v6792_v62  ;;  %6690 = vmatprep.subr.bf16.mxu0 %v6790_v3 }
 0x157   :  { %6111 = vmatmul.mubr.msk.f32.vlgmr.msra.gmra.mrb[34].mxu1 %vm273_vm2, %v1529_v61  ;;  %6342 = vmatmul.mubr.msk.f32.vlgmr.msra.gmra.mrb[52].mxu0 %vm273_vm2, %v4161_v13 }
 0x158   :  { %6590 = vmatpush3.bf16.msra.mxu1 %v7075_v29  ;;  %6692 = vmatpush3.bf16.msra.mxu0 %v7105_v45  ;;  %v1758_v29 = vld [vmem:[#allocation2 + $0xa] sm:$0x3] }
 0x159   :  { %6117 = vmatprep.mubr.msk.f32.mxu1 %vm6791_vm1, %v6792_v62  ;;  %6591 = vmatprep.subr.bf16.mxu1 %v6790_v3 }
 0x15a   :  { %6355 = vmatprep.mubr.msk.f32.mxu0 %vm6791_vm1, %v6792_v62  ;;  %6696 = vmatprep.subr.bf16.mxu0 %v6790_v3 }
 0x15b   :  { %6118 = vmatmul.mubr.msk.f32.vlgmr.msra.gmra.mrb[36].mxu1 %vm273_vm2, %v1681_v14  ;;  %6356 = vmatmul.mubr.msk.f32.vlgmr.msra.gmra.mrb[54].mxu0 %vm273_vm2, %v4315_v15  ;;  %v6739_v14 = vpack.c.bf16 %v5408_v12, %v5407_v10 }
 0x15c   :  { %6593 = vmatpush3.bf16.msra.mxu1 %v7090_v37  ;;  %6698 = vmatpush3.bf16.msra.mxu0 %v7149_v9 }
 0x15d   :  { %6124 = vmatprep.mubr.msk.f32.mxu1 %vm6791_vm1, %v6792_v62  ;;  %6594 = vmatprep.subr.bf16.mxu1 %v6790_v3 }
 0x15e   :  { %6369 = vmatprep.mubr.msk.f32.mxu0 %vm6791_vm1, %v6792_v62  ;;  %6702 = vmatprep.subr.bf16.mxu0 %v6790_v3 }
 0x15f   :  { %6125 = vmatmul.mubr.msk.f32.vlgmr.msra.gmra.mrb[38].mxu1 %vm273_vm2, %v1758_v29  ;;  %6370 = vmatmul.mubr.msk.f32.vlgmr.msra.gmra.mrb[56].mxu0 %vm273_vm2, %v4469_v16 }
 0x160   :  { %6596 = vmatpush3.bf16.msra.mxu1 %v7105_v45  ;;  %6131 = vmatprep.mubr.msk.f32.mxu1 %vm6791_vm1, %v6792_v62  ;;  %v1912_v45 = vld [vmem:[#allocation2 + $0x14] sm:$0x3] }
 0x161   :  { %6597 = vmatprep.subr.bf16.mxu1 %v6790_v3  ;;  %6704 = vmatpush3.bf16.msra.mxu0 %v7039_v6  ;;  %v4777_v6 = vld [vmem:[#allocation2 + $0x40] sm:$0x3] }
 0x162   :  { %6383 = vmatprep.mubr.msk.f32.mxu0 %vm6791_vm1, %v6792_v62  ;;  %6708 = vmatprep.subr.bf16.mxu0 %v6790_v3 }
 0x163   :  { %6132 = vmatmul.mubr.msk.f32.vlgmr.msra.gmra.mrb[40].mxu1 %vm273_vm2, %v1835_v17  ;;  %v5409_v17 = vld [vmem:[%s7689_s5 + $0x50] sm:$0xff] }
 0x164   :  { %6599 = vmatpush3.bf16.msra.mxu1 %v7126_v56  ;;  %6138 = vmatprep.mubr.msk.f32.mxu1 %vm6791_vm1, %v6792_v62 }
 0x165   :  { %6600 = vmatprep.subr.bf16.mxu1 %v6790_v3  ;;  %6384 = vmatmul.mubr.msk.f32.vlgmr.msra.gmra.mrb[58].mxu0 %vm273_vm2, %v4623_v18  ;;  %v5410_v18 = vld [vmem:[%s7689_s5 + $0x58] sm:$0xff] }
 0x166   :  { %6710 = vmatpush3.bf16.msra.mxu0 %v7128_v57  ;;  %6397 = vmatprep.mubr.msk.f32.mxu0 %vm6791_vm1, %v6792_v62  ;;  %v4931_v57 = vld [vmem:[#allocation2 + $0x4a] sm:$0x3] }
 0x167   :  { %6139 = vmatmul.mubr.msk.f32.vlgmr.msra.gmra.mrb[42].mxu1 %vm273_vm2, %v1912_v45  ;;  %6714 = vmatprep.subr.bf16.mxu0 %v6790_v3 }
 0x168   :  { %6602 = vmatpush3.bf16.msra.mxu1 %v7149_v9  ;;  %6145 = vmatprep.mubr.msk.f32.mxu1 %vm6791_vm1, %v6792_v62  ;;  %v2066_v9 = vld [vmem:[#allocation2 + $0x18] sm:$0x3] }
 0x169   :  { %6603 = vmatprep.subr.bf16.mxu1 %v6790_v3  ;;  %6398 = vmatmul.mubr.msk.f32.vlgmr.msra.gmra.mrb[60].mxu0 %vm273_vm2, %v4777_v6 }
 0x16a   :  { %6716 = vmatpush3.bf16.msra.mxu0 %v7151_v11  ;;  %6411 = vmatprep.mubr.msk.f32.mxu0 %vm6791_vm1, %v6792_v62  ;;  %v5085_v11 = vld [vmem:[#allocation2 + $0x4e] sm:$0x3] }
 0x16b   :  { %6146 = vmatmul.mubr.msk.f32.vlgmr.msra.gmra.mrb[44].mxu1 %vm273_vm2, %v1989_v19  ;;  %6720 = vmatprep.subr.bf16.mxu0 %v6790_v3  ;;  %v6742_v19 = vpack.c.bf16 %v5410_v18, %v5409_v17 }
 0x16c   :  { %6605 = vmatpush3.bf16.msra.mxu1 %v7177_v20  ;;  %6152 = vmatprep.mubr.msk.f32.mxu1 %vm6791_vm1, %v6792_v62 }
 0x16d   :  { %6609 = vmatprep.subr.bf16.mxu1 %v6790_v3  ;;  %6412 = vmatmul.mubr.msk.f32.vlgmr.msra.gmra.mrb[62].mxu0 %vm273_vm2, %v4931_v57 }
 0x16e   :  { %6722 = vmatpush3.bf16.msra.mxu0 %v7179_v23  ;;  %6425 = vmatprep.mubr.msk.f32.mxu0 %vm6791_vm1, %v6792_v62  ;;  %v2374_v23 = vld [vmem:[#allocation2 + $0x26] sm:$0x3] }
 0x16f   :  { %6153 = vmatmul.mubr.msk.f32.vlgmr.msra.gmra.mrb[46].mxu1 %vm273_vm2, %v2066_v9  ;;  %6738 = vmatprep.subr.bf16.mxu0 %v6790_v3 }
 0x170   :  { %6611 = vmatpush3.bf16.msra.mxu1 %v7210_v36  ;;  %6166 = vmatprep.mubr.msk.f32.mxu1 %vm6791_vm1, %v6792_v62 }
 0x171   :  { %6615 = vmatprep.subr.bf16.mxu1 %v6790_v3  ;;  %6426 = vmatmul.mubr.msk.f32.vlgmr.msra.gmra.mrb[64].mxu0 %vm273_vm2, %v5085_v11 }
 0x172   :  { %6465 = vmatprep.mubr.msk.f32.mxu0 %vm6791_vm1, %v6792_v62  ;;  %6740 = vmatpush3.bf16.msra.mxu0 %v6739_v14 }
 0x173   :  { %6167 = vmatmul.mubr.msk.f32.vlgmr.msra.gmra.mrb[48].mxu1 %vm273_vm2, %v2220_v22  ;;  %6741 = vmatprep.subr.bf16.mxu0 %v6790_v3 }
 0x174   :  { %6617 = vmatpush3.bf16.msra.mxu1 %v7240_v48  ;;  %6180 = vmatprep.mubr.msk.f32.mxu1 %vm6791_vm1, %v6792_v62 }
 0x175   :  { %6621 = vmatprep.subr.bf16.mxu1 %v6790_v3 }
 0x176   :  { %6743 = vmatpush3.bf16.msra.mxu0 %v6742_v19 }
 0x177   :  { %6181 = vmatmul.mubr.msk.f32.vlgmr.msra.gmra.mrb[50].mxu1 %vm273_vm2, %v2374_v23  ;;  %6750 = vmatprep.subr.bf16.mxu0 %v6790_v3 }
 0x178   :  { %6623 = vmatpush3.bf16.msra.mxu1 %v7268_v55  ;;  %6194 = vmatprep.mubr.msk.f32.mxu1 %vm6791_vm1, %v6792_v62 }
 0x179   :  { %6627 = vmatprep.subr.bf16.mxu1 %v6790_v3 }
 0x17b   :  { %6195 = vmatmul.mubr.msk.f32.vlgmr.msra.gmra.mrb[52].mxu1 %vm273_vm2, %v2528_v26 }
 0x17c   :  { %6629 = vmatpush3.bf16.msra.mxu1 %v7296_v1  ;;  %6208 = vmatprep.mubr.msk.f32.mxu1 %vm6791_vm1, %v6792_v62 }
 0x17d   :  { %6633 = vmatprep.subr.bf16.mxu1 %v6790_v3 }
 0x17f   :  { %6209 = vmatmul.mubr.msk.f32.vlgmr.msra.gmra.mrb[54].mxu1 %vm273_vm2, %v2682_v30 }
 0x180   :  { %6635 = vmatpush3.bf16.msra.mxu1 %v7061_v21  ;;  %6222 = vmatprep.mubr.msk.f32.mxu1 %vm6791_vm1, %v6792_v62 }
 0x181   :  { %6639 = vmatprep.subr.bf16.mxu1 %v6790_v3 }
 0x183   :  { %6223 = vmatmul.mubr.msk.f32.vlgmr.msra.gmra.mrb[56].mxu1 %vm273_vm2, %v2769_v31 }
 0x184   :  { %6641 = vmatpush3.bf16.msra.mxu1 %v7090_v37  ;;  %6236 = vmatprep.mubr.msk.f32.mxu1 %vm6791_vm1, %v6792_v62 }
 0x185   :  { %6645 = vmatprep.subr.bf16.mxu1 %v6790_v3 }
 0x187   :  { %6237 = vmatmul.mubr.msk.f32.vlgmr.msra.gmra.mrb[58].mxu1 %vm273_vm2, %v2998_v32 }
 0x188   :  { %6647 = vmatpush3.bf16.msra.mxu1 %v7126_v56  ;;  %6250 = vmatprep.mubr.msk.f32.mxu1 %vm6791_vm1, %v6792_v62 }
 0x189   :  { %6651 = vmatprep.subr.bf16.mxu1 %v6790_v3 }
 0x18b   :  { %6251 = vmatmul.mubr.msk.f32.vlgmr.msra.gmra.mrb[60].mxu1 %vm273_vm2, %v3152_v33 }
 0x18c   :  { %6653 = vmatpush3.bf16.msra.mxu1 %v7177_v20  ;;  %6264 = vmatprep.mubr.msk.f32.mxu1 %vm6791_vm1, %v6792_v62 }
 0x18d   :  { %6657 = vmatprep.subr.bf16.mxu1 %v6790_v3 }
 0x18f   :  { %6265 = vmatmul.mubr.msk.f32.vlgmr.msra.gmra.mrb[62].mxu1 %vm273_vm2, %v3306_v34 }
 0x190   :  { %6659 = vmatpush3.bf16.msra.mxu1 %v7210_v36  ;;  %6278 = vmatprep.mubr.msk.f32.mxu1 %vm6791_vm1, %v6792_v62 }
 0x191   :  { %6663 = vmatprep.subr.bf16.mxu1 %v6790_v3 }
 0x193   :  { %6279 = vmatmul.mubr.msk.f32.vlgmr.msra.gmra.mrb[64].mxu1 %vm273_vm2, %v3460_v35 }
 0x194   :  { %6665 = vmatpush3.bf16.msra.mxu1 %v7240_v48  ;;  %6292 = vmatprep.mubr.msk.f32.mxu1 %vm6791_vm1, %v6792_v62 }
 0x195   :  { %6669 = vmatprep.subr.bf16.mxu1 %v6790_v3 }
 0x197   :  { %6293 = vmatmul.mubr.msk.f32.vlgmr.msra.gmra.mrb[66].mxu1 %vm273_vm2, %v3614_v38 }
 0x198   :  { %6671 = vmatpush3.bf16.msra.mxu1 %v7268_v55  ;;  %6306 = vmatprep.mubr.msk.f32.mxu1 %vm6791_vm1, %v6792_v62 }
 0x199   :  { %6675 = vmatprep.subr.bf16.mxu1 %v6790_v3 }
 0x19b   :  { %6307 = vmatmul.mubr.msk.f32.vlgmr.msra.gmra.mrb[68].mxu1 %vm273_vm2, %v3768_v39 }
 0x19c   :  { %6677 = vmatpush3.bf16.msra.mxu1 %v7296_v1  ;;  %6320 = vmatprep.mubr.msk.f32.mxu1 %vm6791_vm1, %v6792_v62 }
 0x19d   :  { %6681 = vmatprep.subr.bf16.mxu1 %v6790_v3 }
 0x19f   :  { %6321 = vmatmul.mubr.msk.f32.vlgmr.msra.gmra.mrb[70].mxu1 %vm273_vm2, %v3922_v40 }
 0x1a0   :  { %6683 = vmatpush3.bf16.msra.mxu1 %v7061_v21  ;;  %6334 = vmatprep.mubr.msk.f32.mxu1 %vm6791_vm1, %v6792_v62  ;;  %v4392_v21 = vld [vmem:[#allocation2 + $0x30] sm:$0x3] }
 0x1a1   :  { %6687 = vmatprep.subr.bf16.mxu1 %v6790_v3 }
 0x1a3   :  { %6335 = vmatmul.mubr.msk.f32.vlgmr.msra.gmra.mrb[72].mxu1 %vm273_vm2, %v4009_v41 }
 0x1a4   :  { %6689 = vmatpush3.bf16.msra.mxu1 %v7090_v37  ;;  %6348 = vmatprep.mubr.msk.f32.mxu1 %vm6791_vm1, %v6792_v62  ;;  %v4546_v37 = vld [vmem:[#allocation2 + $0x34] sm:$0x3] }
 0x1a5   :  { %6693 = vmatprep.subr.bf16.mxu1 %v6790_v3 }
 0x1a7   :  { %6349 = vmatmul.mubr.msk.f32.vlgmr.msra.gmra.mrb[74].mxu1 %vm273_vm2, %v4238_v42 }
 0x1a8   :  { %6695 = vmatpush3.bf16.msra.mxu1 %v7126_v56  ;;  %6362 = vmatprep.mubr.msk.f32.mxu1 %vm6791_vm1, %v6792_v62  ;;  %v4700_v56 = vld [vmem:[#allocation2 + $0x3e] sm:$0x3] }
 0x1a9   :  { %6699 = vmatprep.subr.bf16.mxu1 %v6790_v3 }
 0x1ab   :  { %6363 = vmatmul.mubr.msk.f32.vlgmr.msra.gmra.mrb[76].mxu1 %vm273_vm2, %v4392_v21 }
 0x1ac   :  { %6701 = vmatpush3.bf16.msra.mxu1 %v7177_v20  ;;  %6376 = vmatprep.mubr.msk.f32.mxu1 %vm6791_vm1, %v6792_v62  ;;  %v4854_v20 = vld [vmem:[#allocation2 + $0x42] sm:$0x3] }
 0x1ad   :  { %6705 = vmatprep.subr.bf16.mxu1 %v6790_v3 }
 0x1af   :  { %6377 = vmatmul.mubr.msk.f32.vlgmr.msra.gmra.mrb[78].mxu1 %vm273_vm2, %v4546_v37 }
 0x1b0   :  { %6707 = vmatpush3.bf16.msra.mxu1 %v7210_v36  ;;  %6390 = vmatprep.mubr.msk.f32.mxu1 %vm6791_vm1, %v6792_v62  ;;  %v5008_v36 = vld [vmem:[#allocation2 + $0x4c] sm:$0x3] }
 0x1b1   :  { %6711 = vmatprep.subr.bf16.mxu1 %v6790_v3 }
 0x1b3   :  { %6391 = vmatmul.mubr.msk.f32.vlgmr.msra.gmra.mrb[80].mxu1 %vm273_vm2, %v4700_v56 }
 0x1b4   :  { %6713 = vmatpush3.bf16.msra.mxu1 %v7240_v48  ;;  %6404 = vmatprep.mubr.msk.f32.mxu1 %vm6791_vm1, %v6792_v62  ;;  %v5258_v48 = vld [vmem:[%s7689_s5 + $0x38] sm:$0xff] }
 0x1b5   :  { %6717 = vmatprep.subr.bf16.mxu1 %v6790_v3  ;;  %v6730_v49 = vpack.c.bf16 %v5258_v48, %v5257_v47 }
 0x1b7   :  { %6405 = vmatmul.mubr.msk.f32.vlgmr.msra.gmra.mrb[82].mxu1 %vm273_vm2, %v4854_v20 }
 0x1b8   :  { %6719 = vmatpush3.bf16.msra.mxu1 %v7268_v55  ;;  %6418 = vmatprep.mubr.msk.f32.mxu1 %vm6791_vm1, %v6792_v62 }
 0x1b9   :  { %6723 = vmatprep.subr.bf16.mxu1 %v6790_v3 }
 0x1bb   :  { %6419 = vmatmul.mubr.msk.f32.vlgmr.msra.gmra.mrb[84].mxu1 %vm273_vm2, %v5008_v36 }
 0x1bc   :  { %6725 = vmatpush3.bf16.msra.mxu1 %v7296_v1  ;;  %6432 = vmatprep.mubr.msk.f32.mxu1 %vm6791_vm1, %v6792_v62 }
 0x1bd   :  { %6726 = vmatprep.subr.bf16.mxu1 %v6790_v3 }
 0x1bf   :  { %6433 = vmatmul.mubr.msk.f32.vlgmr.msra.gmra.mrb[86].mxu1 %vm273_vm2, %v5162_v43 }
 0x1c0   :  { %6443 = vmatprep.mubr.msk.f32.mxu1 %vm6791_vm1, %v6792_v62  ;;  %6728 = vmatpush3.bf16.msra.mxu1 %v6727_v46 }
 0x1c1   :  { %6729 = vmatprep.subr.bf16.mxu1 %v6790_v3 }
 0x1c4   :  { %6731 = vmatpush3.bf16.msra.mxu1 %v6730_v49 }
 0x1c5   :  { %6732 = vmatprep.subr.bf16.mxu1 %v6790_v3 }
 0x1e6   :  { %v363_v50 = vpop.f32.mrb[0].mxu1 }
 0x1e7   :  { %v5993_v51 = vpop.f32.mrb[1].mxu1 }
 0x1ea   :  { %v436_v52 = vpop.f32.mrb[2].mxu1 }
 0x1eb   :  { %v437_v53 = vadd.f32 %v436_v52, %v363_v50  ;;  %v6000_v54 = vpop.f32.mrb[3].mxu1 }
 0x1ee   :  { %v512_v55 = vpop.f32.mrb[4].mxu1 }
 0x1ef   :  { %v516_v58 = vadd.f32 %v512_v55, %v437_v53  ;;  %v6007_v59 = vpop.f32.mrb[5].mxu1 }
 0x1f2   :  { %v589_v60 = vpop.f32.mrb[6].mxu1 }
 0x1f3   :  { %v593_v63 = vadd.f32 %v589_v60, %v516_v58  ;;  %v6014_v0 = vpop.f32.mrb[7].mxu1 }
 0x1f6   :  { %v666_v1 = vpop.f32.mrb[8].mxu1  ;;  %v7514_v2 = vpop.f32.mrb[26].mxu0 }
 0x1f7   :  { %v670_v4 = vadd.f32 %v666_v1, %v593_v63  ;;  %v6021_v5 = vpop.f32.mrb[9].mxu1  ;;  %v6161_v8 = vpop.f32.mrb[27].mxu0  ;;  %v7553_v1 = vld [vmem:[%s7688_s4] ss:$0 sm:$0xff] }
 0x1fa   :  { %v743_v61 = vpop.f32.mrb[10].mxu1  ;;  %v7522_v13 = vpop.f32.mrb[28].mxu0 }
 0x1fb   :  { %v747_v15 = vadd.f32 %v743_v61, %v670_v4  ;;  %v6028_v29 = vpop.f32.mrb[11].mxu1  ;;  %v6175_v16 = vpop.f32.mrb[29].mxu0 }
 0x1fe   :  { %v820_v45 = vpop.f32.mrb[12].mxu1  ;;  %v7531_v6 = vpop.f32.mrb[30].mxu0 }
 0x1ff   :  { %v824_v57 = vadd.f32 %v820_v45, %v747_v15  ;;  %v6035_v9 = vpop.f32.mrb[13].mxu1  ;;  %v6189_v11 = vpop.f32.mrb[31].mxu0 }
 0x202   :  { %v897_v22 = vpop.f32.mrb[14].mxu1  ;;  %v7534_v23 = vpop.f32.mrb[32].mxu0 }
 0x203   :  { %v901_v24 = vadd.f32 %v897_v22, %v824_v57  ;;  %v6042_v25 = vpop.f32.mrb[15].mxu1  ;;  %v6203_v26 = vpop.f32.mrb[33].mxu0 }
 0x206   :  { %v974_v27 = vpop.f32.mrb[16].mxu1  ;;  %v7536_v28 = vpop.f32.mrb[34].mxu0 }
 0x207   :  { %v978_v30 = vadd.f32 %v974_v27, %v901_v24  ;;  %v6049_v31 = vpop.f32.mrb[17].mxu1  ;;  %v6217_v32 = vpop.f32.mrb[35].mxu0 }
 0x20a   :  { %v1051_v33 = vpop.f32.mrb[18].mxu1  ;;  %v7538_v34 = vpop.f32.mrb[36].mxu0 }
 0x20b   :  { %v1055_v35 = vadd.f32 %v1051_v33, %v978_v30  ;;  %v6056_v38 = vpop.f32.mrb[19].mxu1  ;;  %v6231_v39 = vpop.f32.mrb[37].mxu0 }
 0x20e   :  { %v1128_v40 = vpop.f32.mrb[20].mxu1  ;;  %v7540_v41 = vpop.f32.mrb[38].mxu0 }
 0x20f   :  { %v1132_v42 = vadd.f32 %v1128_v40, %v1055_v35  ;;  %v6063_v21 = vpop.f32.mrb[21].mxu1  ;;  %v6245_v37 = vpop.f32.mrb[39].mxu0 }
 0x212   :  { %v1205_v56 = vpop.f32.mrb[22].mxu1  ;;  %v7542_v20 = vpop.f32.mrb[40].mxu0 }
 0x213   :  { %v1209_v36 = vadd.f32 %v1205_v56, %v1132_v42  ;;  %v6070_v43 = vpop.f32.mrb[23].mxu1  ;;  %v6259_v7 = vpop.f32.mrb[41].mxu0 }
 0x216   :  { %v1282_v44 = vpop.f32.mrb[24].mxu1  ;;  %v7544_v46 = vpop.f32.mrb[42].mxu0 }
 0x217   :  { %v1286_v47 = vadd.f32 %v1282_v44, %v1209_v36  ;;  %v6077_v48 = vpop.f32.mrb[25].mxu1  ;;  %v6273_v49 = vpop.f32.mrb[43].mxu0 }
 0x21a   :  { %v1359_v50 = vpop.f32.mrb[26].mxu1  ;;  %v7546_v51 = vpop.f32.mrb[44].mxu0 }
 0x21b   :  { %v1363_v52 = vadd.f32 %v1359_v50, %v1286_v47  ;;  %v6084_v53 = vpop.f32.mrb[27].mxu1  ;;  %v6287_v54 = vpop.f32.mrb[45].mxu0 }
 0x21e   :  { %v1436_v55 = vpop.f32.mrb[28].mxu1  ;;  %v7548_v58 = vpop.f32.mrb[46].mxu0 }
 0x21f   :  { %v1440_v59 = vadd.f32 %v1436_v55, %v1363_v52  ;;  %v6091_v60 = vpop.f32.mrb[29].mxu1  ;;  %v6301_v63 = vpop.f32.mrb[47].mxu0 }
 0x222   :  { %v1513_v0 = vpop.f32.mrb[30].mxu1  ;;  %v7555_v4 = vpop.f32.mrb[48].mxu0 }
 0x223   :  { %v1517_v5 = vadd.f32 %v1513_v0, %v1440_v59  ;;  %v6098_v8 = vpop.f32.mrb[31].mxu1  ;;  %v6315_v10 = vpop.f32.mrb[49].mxu0 }
 0x225   :  { %v1525_v12 = vadd.f32 %v7553_v1, %v1517_v5 }
 0x226   :  { %v1604_v61 = vpop.f32.mrb[32].mxu1  ;;  %v7558_v14 = vpop.f32.mrb[50].mxu0 }
 0x227   :  { %v1526_v15 = vmax.f32 %v1525_v12, 0.0  ;;  %v6105_v29 = vpop.f32.mrb[33].mxu1  ;;  %v6329_v16 = vpop.f32.mrb[51].mxu0 }
 0x229   :  { %1528 = vst.msk [vmem:[#allocation3] sm:$0x3] %vm1527_vm3, %v1526_v15 }
 0x22a   :  { %v1677_v17 = vpop.f32.mrb[34].mxu1  ;;  %v7561_v18 = vpop.f32.mrb[52].mxu0 }
 0x22b   :  { %v1678_v45 = vadd.f32 %v1677_v17, %v1604_v61  ;;  %v6112_v19 = vpop.f32.mrb[35].mxu1  ;;  %v6343_v57 = vpop.f32.mrb[53].mxu0 }
 0x22e   :  { %v1753_v9 = vpop.f32.mrb[36].mxu1  ;;  %v7563_v11 = vpop.f32.mrb[54].mxu0 }
 0x22f   :  { %v1757_v22 = vadd.f32 %v1753_v9, %v1678_v45  ;;  %v6119_v24 = vpop.f32.mrb[37].mxu1  ;;  %v6357_v25 = vpop.f32.mrb[55].mxu0 }
 0x232   :  { %v1830_v26 = vpop.f32.mrb[38].mxu1  ;;  %v7565_v27 = vpop.f32.mrb[56].mxu0 }
 0x233   :  { %v1834_v30 = vadd.f32 %v1830_v26, %v1757_v22  ;;  %v6126_v31 = vpop.f32.mrb[39].mxu1  ;;  %v6371_v32 = vpop.f32.mrb[57].mxu0 }
 0x236   :  { %v1907_v33 = vpop.f32.mrb[40].mxu1 }
 0x237   :  { %v1911_v35 = vadd.f32 %v1907_v33, %v1834_v30  ;;  %v6133_v38 = vpop.f32.mrb[41].mxu1  ;;  %v5251_v30 = vld [vmem:[%s7689_s5 + $0x8] sm:$0xff] }
 0x238   :  { %v7567_v39 = vpop.f32.mrb[58].mxu0  ;;  %v5253_v38 = vld [vmem:[%s7689_s5 + $0x18] sm:$0xff] }
 0x239   :  { %v6385_v40 = vpop.f32.mrb[59].mxu0 }
 0x23a   :  { %v1984_v42 = vpop.f32.mrb[42].mxu1 }
 0x23b   :  { %v1988_v21 = vadd.f32 %v1984_v42, %v1911_v35  ;;  %v6140_v37 = vpop.f32.mrb[43].mxu1 }
 0x23c   :  { %v7569_v56 = vpop.f32.mrb[60].mxu0 }
 0x23d   :  { %v6399_v36 = vpop.f32.mrb[61].mxu0 }
 0x23e   :  { %v2061_v43 = vpop.f32.mrb[44].mxu1 }
 0x23f   :  { %v2065_v7 = vadd.f32 %v2061_v43, %v1988_v21  ;;  %v6147_v44 = vpop.f32.mrb[45].mxu1  ;;  %v5486_v43 = vld [vmem:[%s7689_s5 + $0x60] sm:$0xff] }
 0x240   :  { %v7571_v47 = vpop.f32.mrb[62].mxu0 }
 0x241   :  { %v6413_v48 = vpop.f32.mrb[63].mxu0 }
 0x242   :  { %v2138_v49 = vpop.f32.mrb[46].mxu1 }
 0x243   :  { %v2142_v50 = vadd.f32 %v2138_v49, %v2065_v7  ;;  %v6154_v52 = vpop.f32.mrb[47].mxu1  ;;  %v5487_v7 = vld [vmem:[%s7689_s5 + $0x68] sm:$0xff] }
 0x244   :  { %v7573_v53 = vpop.f32.mrb[64].mxu0  ;;  %v6745_v48 = vpack.c.bf16 %v5487_v7, %v5486_v43  ;;  %v5488_v52 = vld [vmem:[%s7689_s5 + $0x70] sm:$0xff] }
 0x245   :  { %v2219_v54 = vadd.f32 %v7514_v2, %v2142_v50  ;;  %v6427_v55 = vpop.f32.mrb[65].mxu0 }
 0x246   :  { %v2292_v59 = vpop.f32.mrb[48].mxu1  ;;  %v5249_v55 = vld [vmem:[#allocation3] sm:$0x3] }
 0x247   :  { %v2296_v60 = vadd.f32 %v2292_v59, %v2219_v54  ;;  %v6168_v63 = vpop.f32.mrb[49].mxu1  ;;  %v5489_v54 = vld [vmem:[%s7689_s5 + $0x78] sm:$0xff] }
 0x249   :  { %v2373_v0 = vadd.f32 %v7522_v13, %v2296_v60  ;;  %v6748_v60 = vpack.c.bf16 %v5489_v54, %v5488_v52  ;;  %v5580_v52 = vld [vmem:[%s7691_s7 + $0x38] sm:$0xff] }
 0x24a   :  { %v2446_v5 = vpop.f32.mrb[50].mxu1 }
 0x24b   :  { %v2450_v8 = vadd.f32 %v2446_v5, %v2373_v0  ;;  %v6182_v10 = vpop.f32.mrb[51].mxu1 }
 0x24d   :  { %v2527_v12 = vadd.f32 %v7531_v6, %v2450_v8 }
 0x24e   :  { %v2600_v61 = vpop.f32.mrb[52].mxu1 }
 0x24f   :  { %v2604_v15 = vadd.f32 %v2600_v61, %v2527_v12  ;;  %v6196_v29 = vpop.f32.mrb[53].mxu1 }
 0x251   :  { %v2681_v16 = vadd.f32 %v7534_v23, %v2604_v15  ;;  %v5250_v23 = vld [vmem:[%s7689_s5] sm:$0xff] }
 0x252   :  { %v2754_v17 = vpop.f32.mrb[54].mxu1 }
 0x253   :  { %v2758_v45 = vadd.f32 %v2754_v17, %v2681_v16  ;;  %v6210_v19 = vpop.f32.mrb[55].mxu1 }
 0x255   :  { %v2766_v2 = vadd.f32 %v7553_v1, %v2758_v45 }
 0x256   :  { %v2917_v57 = vpop.f32.mrb[56].mxu1 }
 0x257   :  { %v2767_v9 = vmax.f32 %v2766_v2, 0.0  ;;  %v2918_v22 = vadd.f32 %v2917_v57, %v7536_v28  ;;  %v6224_v13 = vpop.f32.mrb[57].mxu1  ;;  %v6733_v28 = vpack.c.bf16 %v5251_v30, %v5250_v23 }
 0x259   :  { %2768 = vst.msk [vmem:[#allocation3 + $0x2] sm:$0x3] %vm1527_vm3, %v2767_v9  ;;  %v2997_v24 = vadd.f32 %v7538_v34, %v2918_v22  ;;  %v5252_v34 = vld [vmem:[%s7689_s5 + $0x10] sm:$0xff] }
 0x25a   :  { %v3070_v6 = vpop.f32.mrb[58].mxu1  ;;  %v6736_v21 = vpack.c.bf16 %v5253_v38, %v5252_v34 }
 0x25b   :  { %v3074_v25 = vadd.f32 %v3070_v6, %v2997_v24  ;;  %v6238_v26 = vpop.f32.mrb[59].mxu1 }
 0x25d   :  { %v3151_v31 = vadd.f32 %v7540_v41, %v3074_v25 }
 0x25e   :  { %v3224_v32 = vpop.f32.mrb[60].mxu1 }
 0x25f   :  { %v3228_v33 = vadd.f32 %v3224_v32, %v3151_v31  ;;  %v6252_v35 = vpop.f32.mrb[61].mxu1 }
 0x260   :  { %v5254_v40 = vld [vmem:[#allocation3 + $0x2] sm:$0x3] }
 0x261   :  { %6444 = vmatmul.mubr.msk.f32.vlgmr.msra.gmra.mrb[88].mxu1 %vm5259_vm4, %v5254_v40  ;;  %v3305_v42 = vadd.f32 %v7542_v20, %v3228_v33 }
 0x262   :  { %6734 = vmatpush3.bf16.msra.mxu1 %v6733_v28  ;;  %v3378_v41 = vpop.f32.mrb[62].mxu1  ;;  %6454 = vmatprep.mubr.msk.f32.mxu1 %vm6791_vm1, %v6792_v62 }
 0x263   :  { %v3382_v37 = vadd.f32 %v3378_v41, %v3305_v42  ;;  %v6266_v36 = vpop.f32.mrb[63].mxu1  ;;  %6735 = vmatprep.subr.bf16.mxu1 %v6790_v3 }
 0x265   :  { %v3459_v20 = vadd.f32 %v7544_v46, %v3382_v37 }
 0x266   :  { %6737 = vmatpush3.bf16.msra.mxu1 %v6736_v21  ;;  %v3532_v44 = vpop.f32.mrb[64].mxu1 }
 0x267   :  { %v3536_v49 = vadd.f32 %v3532_v44, %v3459_v20  ;;  %v6280_v50 = vpop.f32.mrb[65].mxu1  ;;  %6744 = vmatprep.subr.bf16.mxu1 %v6790_v3  ;;  %v5577_v44 = vld [vmem:[%s7691_s7 + $0x20] sm:$0xff] }
 0x268   :  { %v5579_v50 = vld [vmem:[%s7691_s7 + $0x30] sm:$0xff] }
 0x269   :  { %6455 = vmatmul.mubr.msk.f32.vlgmr.msra.gmra.mrb[90].mxu1 %vm5259_vm4, %v5249_v55  ;;  %v3613_v46 = vadd.f32 %v7546_v51, %v3536_v49  ;;  %v6760_v54 = vpack.c.bf16 %v5580_v52, %v5579_v50 }
 0x26a   :  { %v3686_v59 = vpop.f32.mrb[66].mxu1  ;;  %6746 = vmatpush3.bf16.msra.mxu1 %v6745_v48  ;;  %6476 = vmatprep.mubr.msk.f32.mxu1 %vm6791_vm1, %v6792_v62  ;;  %v5578_v48 = vld [vmem:[%s7691_s7 + $0x28] sm:$0xff] }
 0x26b   :  { %v3690_v63 = vadd.f32 %v3686_v59, %v3613_v46  ;;  %v6294_v0 = vpop.f32.mrb[67].mxu1  ;;  %6747 = vmatprep.subr.bf16.mxu1 %v6790_v3  ;;  %v6757_v49 = vpack.c.bf16 %v5578_v48, %v5577_v44 }
 0x26d   :  { %v3767_v5 = vadd.f32 %v7548_v58, %v3690_v63 }
 0x26e   :  { %v3840_v8 = vpop.f32.mrb[68].mxu1  ;;  %6749 = vmatpush3.bf16.msra.mxu1 %v6748_v60 }
 0x26f   :  { %v3844_v10 = vadd.f32 %v3840_v8, %v3767_v5  ;;  %v6308_v12 = vpop.f32.mrb[69].mxu1 }
 0x271   :  { %v3921_v61 = vadd.f32 %v7555_v4, %v3844_v10 }
 0x272   :  { %v3994_v15 = vpop.f32.mrb[70].mxu1 }
 0x273   :  { %v3998_v51 = vadd.f32 %v3994_v15, %v3921_v61  ;;  %v6322_v29 = vpop.f32.mrb[71].mxu1 }
 0x274   :  { %v5764_v29 = vld [vmem:[%s7692_s8] ss:$0 sm:$0xff] }
 0x275   :  { %v4006_v16 = vadd.f32 %v7553_v1, %v3998_v51 }
 0x276   :  { %v4157_v17 = vpop.f32.mrb[72].mxu1 }
 0x277   :  { %v4007_v45 = vmax.f32 %v4006_v16, 0.0  ;;  %v4158_v19 = vadd.f32 %v4157_v17, %v7558_v14  ;;  %v6336_v2 = vpop.f32.mrb[73].mxu1 }
 0x279   :  { %4008 = vst.msk [vmem:[#allocation3 + $0x4] sm:$0x3] %vm1527_vm3, %v4007_v45  ;;  %v4237_v58 = vadd.f32 %v7561_v18, %v4158_v19 }
 0x27a   :  { %v4310_v57 = vpop.f32.mrb[74].mxu1 }
 0x27b   :  { %v4314_v9 = vadd.f32 %v4310_v57, %v4237_v58  ;;  %v6350_v22 = vpop.f32.mrb[75].mxu1 }
 0x27d   :  { %v4391_v13 = vadd.f32 %v7563_v11, %v4314_v9 }
 0x27e   :  { %v4464_v4 = vpop.f32.mrb[76].mxu1 }
 0x27f   :  { %v4468_v24 = vadd.f32 %v4464_v4, %v4391_v13  ;;  %v6364_v6 = vpop.f32.mrb[77].mxu1 }
 0x280   :  { %v5406_v25 = vld [vmem:[#allocation3 + $0x4] sm:$0x3] }
 0x281   :  { %6466 = vmatmul.mubr.msk.f32.vlgmr.msra.gmra.mrb[66].mxu0 %vm5259_vm4, %v5406_v25  ;;  %v4545_v26 = vadd.f32 %v7565_v27, %v4468_v24 }
 0x282   :  { %v4618_v23 = vpop.f32.mrb[78].mxu1  ;;  %6495 = vmatprep.mubr.msk.f32.mxu0 %vm6791_vm1, %v6792_v62 }
 0x283   :  { %v4622_v14 = vadd.f32 %v4618_v23, %v4545_v26  ;;  %v6378_v30 = vpop.f32.mrb[79].mxu1 }
 0x285   :  { %v4699_v18 = vadd.f32 %v7567_v39, %v4622_v14 }
 0x286   :  { %v4772_v31 = vpop.f32.mrb[80].mxu1 }
 0x287   :  { %v4776_v32 = vadd.f32 %v4772_v31, %v4699_v18  ;;  %v6392_v28 = vpop.f32.mrb[81].mxu1 }
 0x289   :  { %v4853_v11 = vadd.f32 %v7569_v56, %v4776_v32  ;;  %v5573_v56 = vld [vmem:[%s7691_s7] sm:$0xff] }
 0x28a   :  { %v4926_v33 = vpop.f32.mrb[82].mxu1 }
 0x28b   :  { %v4930_v35 = vadd.f32 %v4926_v33, %v4853_v11  ;;  %v6406_v34 = vpop.f32.mrb[83].mxu1 }
 0x28d   :  { %v5007_v38 = vadd.f32 %v7571_v47, %v4930_v35  ;;  %v5574_v47 = vld [vmem:[%s7691_s7 + $0x8] sm:$0xff] }
 0x28e   :  { %v5080_v40 = vpop.f32.mrb[84].mxu1  ;;  %v6751_v7 = vpack.c.bf16 %v5574_v47, %v5573_v56 }
 0x28f   :  { %v5084_v27 = vadd.f32 %v5080_v40, %v5007_v38  ;;  %v6420_v42 = vpop.f32.mrb[85].mxu1 }
 0x290   :  { %6752 = vmatpush3.bf16.msra.mxu0 %v6751_v7 }
 0x291   :  { %v5161_v41 = vadd.f32 %v7573_v53, %v5084_v27  ;;  %v5575_v53 = vld [vmem:[%s7691_s7 + $0x10] sm:$0xff]  ;;  %6753 = vmatprep.subr.bf16.mxu0 %v6790_v3 }
 0x292   :  { %v5234_v62 = vpop.f32.mrb[86].mxu1 }
 0x293   :  { %v5238_v21 = vadd.f32 %v5234_v62, %v5161_v41  ;;  %v6434_v37 = vpop.f32.mrb[87].mxu1 }
 0x295   :  { %v5246_v39 = vadd.f32 %v7553_v1, %v5238_v21  ;;  %v5576_v1 = vld [vmem:[%s7691_s7 + $0x18] sm:$0xff] }
 0x296   :  { %v6754_v20 = vpack.c.bf16 %v5576_v1, %v5575_v53 }
 0x297   :  { %v5247_v36 = vmax.f32 %v5246_v39, 0.0 }
 0x298   :  { %6755 = vmatpush3.bf16.msra.mxu0 %v6754_v20 }
 0x299   :  { %5248 = vst.msk [vmem:[#allocation3 + $0x6] sm:$0x3] %vm1527_vm3, %v5247_v36  ;;  %6756 = vmatprep.subr.bf16.mxu0 %v6790_v3 }
 0x29c   :  { %6758 = vmatpush3.bf16.msra.mxu0 %v6757_v49 }
 0x29d   :  { %6759 = vmatprep.subr.bf16.mxu0 %v6790_v3  ;;  %v5763_v3 = vld [vmem:[%s7690_s6] ss:$0 sm:$0xff] }
 0x2a0   :  { %v5485_v43 = vld [vmem:[#allocation3 + $0x6] sm:$0x3]  ;;  %6761 = vmatpush3.bf16.msra.mxu0 %v6760_v54 }
 0x2a1   :  { %6477 = vmatmul.mubr.msk.f32.vlgmr.msra.gmra.mrb[92].mxu1 %vm5259_vm4, %v5485_v43 }
 0x334   :  { %v5329_v55 = vpop.f32.mrb[88].mxu1 }
 0x335   :  { %v6445_v46 = vpop.f32.mrb[89].mxu1 }
 0x33c   :  { %v5402_v59 = vpop.f32.mrb[90].mxu1 }
 0x33d   :  { %v5403_v60 = vadd.f32 %v5402_v59, %v5329_v55  ;;  %v6456_v63 = vpop.f32.mrb[91].mxu1 }
 0x354   :  { %v5480_v0 = vpop.f32.mrb[66].mxu0 }
 0x355   :  { %v5484_v5 = vadd.f32 %v5480_v0, %v5403_v60  ;;  %v6467_v8 = vpop.f32.mrb[67].mxu0 }
 0x374   :  { %v5559_v10 = vpop.f32.mrb[92].mxu1 }
 0x375   :  { %v5563_v12 = vadd.f32 %v5559_v10, %v5484_v5  ;;  %v6478_v61 = vpop.f32.mrb[93].mxu1 }
 0x377   :  { %v5571_v15 = vadd.f32 %v5763_v3, %v5563_v12 }
 0x379   :  { %v5572_v51 = vmax.f32 %v5571_v15, 0.0 }
 0x37b   :  { %6496 = vmatmul.mubr.msk.f32.vlgmr.msra.gmra.mrb[68].mxu0 %vm90_vm0, %v5572_v51 }
 0x44e   :  { %v5657_v16 = vpop.f32.mrb[68].mxu0 }
 0x44f   :  { %v5658_v17 = vadd.f32 %v5764_v29, %v5657_v16  ;;  %v6497_v45 = vpop.f32.mrb[69].mxu0 }
 0x451   :  { %5662 = vst.msk [vmem:[#allocation4] sm:$0x3] %vm5661_vm5, %v5658_v17 }
 0x452   :  { %6777 = shalt.err (!%p6774_p4)
}
 0x453   :  { %s6778_s20 = scalar_lea.hbm %s7693_s9, 32 }
 0x454   :  { %p6779_p5 = scmp.ne.s32.totalorder %s7693_s9, %s6778_s20  ;;  %p6782_p6 = scmp.lt.u32.totalorder %s6778_s20, %s7693_s9 }
 0x456   :  { %p6784_p7 = pnand %p6782_p6, %p6779_p5 }
 0x458   :  { %6787 = shalt.err (!%p6784_p7)
}
 0x459   :  { %5672 = dma.vmem_to_hbm [thread:$0]  %s5670_s17, 32, %s7693_s9, [#allocation5]  }
 0x45a   :  { %6788 = dma.done.wait [#allocation5], 32  }
 0x45b   :  { %6789 = vsyncadd [#allocation5], 4294967264 }
 0x45c   :  { %5676 = vsyncpa [#allocation5], 1 }

</bundles_post_ra>
